<compile_context>
chip_gen: v6e
topology: v6e:2x2x1
jax: 0.10.0
libtpu: 0.0.40
codegen_flags: <defaults>
</compile_context>

<pallas_src>
import math

import jax
import jax.numpy as jnp
from jax.experimental import pallas as pl
from jax.experimental.pallas import tpu as pltpu

EPS = 1e-5  # nn.BatchNorm2d default
_NT = (((1,), (1,)), ((), ()))  # dot_general: contract the last (lane) axis of both


def decoder_kernel(x_ref, w3_ref, g3_ref, b3_ref, w4t_ref, g4_ref, b4_ref,
                   w5t_ref, bias5_ref, o_ref, h3_ref):
    f32 = jnp.float32
    bf16 = jnp.bfloat16
    r0 = x_ref.shape[0]                      # N*H*W input pixels

    # ---- deconv3: one (r0,256)@(256,512) bf16 MXU matmul, then ReLU ----------
    # w3 columns are ordered g3*128 + co, with g3 = k3i*2 + k3j
    y3 = jnp.dot(x_ref[...], w3_ref[...], preferred_element_type=f32)
    y3 = jnp.maximum(y3, 0.0)

    # ---- BN3 batch stats (one pass, on the ReLU output) fused with the
    #      lane -> row repack of the 4 kernel-offset slabs into h3 --------------
    sum3 = jnp.zeros((1, 128), f32)
    sq3 = jnp.zeros((1, 128), f32)
    for g in range(4):                       # static unroll; 128-aligned slices
        blk = y3[:, g * 128:(g + 1) * 128]
        sum3 = sum3 + jnp.sum(blk, axis=0, keepdims=True)
        sq3 = sq3 + jnp.sum(blk * blk, axis=0, keepdims=True)
        h3_ref[g * r0:(g + 1) * r0, :] = blk.astype(bf16)   # rows: (g3, n, i, j)
    n3 = 4.0 * r0                            # N * 2H * 2W samples per channel
    mean3 = sum3 / n3
    var3 = jnp.maximum(sq3 / n3 - mean3 * mean3, 0.0)       # biased (training) var
    s3 = g3_ref[...] * jax.lax.rsqrt(var3 + EPS)            # (1,128)
    t3 = b3_ref[...] - mean3 * s3                           # (1,128)

    # ---- deconv4: BN3's affine folded into the (transposed) weight + a bias ---
    # w4t rows = g4*64 + co, lanes = ci  ->  NT matmul contracts the lane axis,
    # so the per-input-channel scale s3 is a plain lane-broadcast on the weight.
    w4s = (w4t_ref[...] * s3).astype(bf16)                              # (256,128)
    bias4 = jax.lax.dot_general(jnp.broadcast_to(t3, (8, 128)), w4t_ref[...],
                                _NT, preferred_element_type=f32)[0:1, :]  # (1,256)
    y4 = jax.lax.dot_general(h3_ref[...], w4s, _NT,
                             preferred_element_type=f32)                # (4r0,256)
    y4 = jnp.maximum(y4 + bias4, 0.0)        # ReLU; lane-dense h4 (g4 in lanes)

    # ---- BN4 batch stats: channel co lives at lanes g4*64+co -> fold 4 groups --
    rsum = jnp.sum(y4, axis=0, keepdims=True)               # (1,256)
    rsq = jnp.sum(y4 * y4, axis=0, keepdims=True)           # (1,256)
    sum4 = rsum[:, 0:64] + rsum[:, 64:128] + rsum[:, 128:192] + rsum[:, 192:256]
    sq4 = rsq[:, 0:64] + rsq[:, 64:128] + rsq[:, 128:192] + rsq[:, 192:256]
    n4 = 16.0 * r0                           # N * 4H * 4W samples per channel
    mean4 = sum4 / n4
    var4 = jnp.maximum(sq4 / n4 - mean4 * mean4, 0.0)
    s4 = g4_ref[...] * jax.lax.rsqrt(var4 + EPS)            # (1,64)
    t4 = b4_ref[...] - mean4 * s4                           # (1,64)
    s4w = jnp.concatenate([s4, s4, s4, s4], axis=1)         # (1,256) lane tile
    t4w = jnp.concatenate([t4, t4, t4, t4], axis=1)         # (1,256)

    # ---- deconv5: block-diagonal transposed weight, BN4 folded, + bias, tanh ---
    # w5t rows = g4*32 + (g5*3 + co, padded 12->32); lanes = g4*64 + ci
    w5s = (w5t_ref[...] * s4w).astype(bf16)                 # (128,256)
    bias5 = bias5_ref[...] + jax.lax.dot_general(
        jnp.broadcast_to(t4w, (8, 256)), w5t_ref[...], _NT,
        preferred_element_type=f32)[0:1, :]                 # (1,128)
    y5 = jax.lax.dot_general(y4.astype(bf16), w5s, _NT,
                             preferred_element_type=f32)    # (4r0,128)
    o_ref[...] = jnp.tanh(y5 + bias5)


def decoder_pallas(x_rows, w3m, g3, b3, w4t, g4, b4, w5t, bias5p):
    r0 = x_rows.shape[0]
    return pl.pallas_call(
        decoder_kernel,
        out_shape=jax.ShapeDtypeStruct((4 * r0, 128), jnp.float32),
        scratch_shapes=[
            pltpu.VMEM((4 * r0, 128), jnp.bfloat16),   # repacked deconv3 output
        ],
        compiler_params=pltpu.CompilerParams(vmem_limit_bytes=48 * 1024 * 1024),
    )(x_rows, w3m, g3, b3, w4t, g4, b4, w5t, bias5p)


# ---------------- parameters (PyTorch shapes / init statistics) ----------------

def init_params(key):
    k3, k4, k5, kb = jax.random.split(key, 4)
    # PyTorch ConvTranspose2d weight layout: (C_in, C_out, kH, kW)
    # kaiming_normal_: std = sqrt(2 / fan_in), fan_in = weight.size(1)*kH*kW
    w3 = jax.random.normal(k3, (256, 128, 2, 2), jnp.float32) * math.sqrt(2.0 / (128 * 4))
    w4 = jax.random.normal(k4, (128, 64, 2, 2), jnp.float32) * math.sqrt(2.0 / (64 * 4))
    # xavier_normal_: std = sqrt(2 / (fan_in + fan_out)) = sqrt(2 / ((3 + 64) * 4))
    w5 = jax.random.normal(k5, (64, 3, 2, 2), jnp.float32) * math.sqrt(2.0 / ((3 + 64) * 4))
    # deconv5 bias: default ConvTranspose2d init U(-1/sqrt(fan_in), +)
    bnd = 1.0 / math.sqrt(3 * 4)
    b5 = jax.random.uniform(kb, (3,), jnp.float32, -bnd, bnd)

    g3 = jnp.ones((1, 128), jnp.float32)
    b3 = jnp.zeros((1, 128), jnp.float32)
    g4 = jnp.ones((1, 64), jnp.float32)
    b4 = jnp.zeros((1, 64), jnp.float32)

    # ---- matmul-form weights, precomputed ONCE (hoisted out of the forward) ----
    # deconv3: (ci, g3*128 + co), direct bf16 MXU operand
    w3m = jnp.transpose(w3, (0, 2, 3, 1)).reshape(256, 4 * 128).astype(jnp.bfloat16)
    # deconv4, transposed for an A@B.T matmul: rows g4*64+co, lanes ci
    # (kept f32: the BN3 scale is folded into it in-kernel before the bf16 cast)
    w4t = jnp.transpose(w4, (2, 3, 1, 0)).reshape(4 * 64, 128)
    # deconv5, block-diagonal over the 4 g4 lane groups (transposed):
    #   rows g4*32 + (g5*3+co, padded 12->32); lanes g4*64 + ci
    w5m = jnp.transpose(w5, (2, 3, 1, 0)).reshape(4 * 3, 64)
    w5t = jnp.zeros((128, 256), jnp.float32)
    for g in range(4):
        w5t = w5t.at[g * 32:g * 32 + 12, g * 64:(g + 1) * 64].set(w5m)
    bias5p = jnp.zeros((1, 128), jnp.float32)
    for g in range(4):
        bias5p = bias5p.at[0, g * 32:g * 32 + 12].set(jnp.tile(b5, 4))

    kernel_params = (w3m, g3, b3, w4t, g4, b4, w5t, bias5p)
    raw_params = (w3, w4, w5, b5)
    return kernel_params, raw_params


# ---------------- forward ----------------

@jax.jit
def decoder_forward(x, w3m, g3, b3, w4t, g4, b4, w5t, bias5p):
    n, ci, h, w = x.shape
    r0 = n * h * w
    # NCHW -> (N*H*W, C_in) pixel rows, cast to the bf16 MXU operand (tiny, fused)
    x_rows = jnp.transpose(x, (0, 2, 3, 1)).reshape(r0, ci).astype(jnp.bfloat16)

    y = decoder_pallas(x_rows, w3m, g3, b3, w4t, g4, b4, w5t, bias5p)

    # rows are (k3i, k3j, n, i, j); columns are g4*32 + (k5i*2+k5j)*3 + co (12/32 used)
    y = y.reshape(2, 2, n, h, w, 4, 32)[..., :12]
    y = y.reshape(2, 2, n, h, w, 2, 2, 2, 2, 3)  # (k3i,k3j,n,i,j,k4i,k4j,k5i,k5j,co)
    # final pixel: (8i + 4*k3i + 2*k4i + k5i, 8j + 4*k3j + 2*k4j + k5j)
    y = jnp.transpose(y, (2, 9, 3, 0, 5, 7, 4, 1, 6, 8))
    return y.reshape(n, 3, 8 * h, 8 * w)


# ---------------- independent pure-JAX reference (for the value check) ----------

@jax.jit
def decoder_reference(x, w3, w4, w5, b5):
    hi = jax.lax.Precision.HIGHEST

    def deconv_k2s2(a, wgt):            # a: (N,Ci,H,W); wgt: (Ci,Co,2,2)
        y = jnp.einsum('nchw,cokl->nohwkl', a, wgt, precision=hi)
        nb, co, hh, ww = y.shape[:4]
        return jnp.transpose(y, (0, 1, 2, 4, 3, 5)).reshape(nb, co, 2 * hh, 2 * ww)

    def bn_train(a):                    # gamma=1, beta=0, biased batch variance
        mean = jnp.mean(a, axis=(0, 2, 3), keepdims=True)
        var = jnp.mean(jnp.square(a - mean), axis=(0, 2, 3), keepdims=True)
        return (a - mean) * jax.lax.rsqrt(var + EPS)

    a = bn_train(jax.nn.relu(deconv_k2s2(x, w3)))
    a = bn_train(jax.nn.relu(deconv_k2s2(a, w4)))
    return jnp.tanh(deconv_k2s2(a, w5) + b5.reshape(1, 3, 1, 1))


if __name__ == "__main__":
    key = jax.random.PRNGKey(0)
    kx, kp = jax.random.split(key)
    kernel_params, raw_params = init_params(kp)
    x = jax.random.normal(kx, (2, 256, 4, 4), jnp.float32)   # NCHW input

    out = decoder_forward(x, *kernel_params)
    out = jax.block_until_ready(out)
    assert out.shape == (2, 3, 32, 32) and out.dtype == jnp.float32
    assert bool(jnp.all(jnp.isfinite(out))) and bool(jnp.all(jnp.abs(out) <= 1.0))

    # value-level check against the independent f32 reference (bf16-MXU tolerance)
    ref = jax.block_until_ready(decoder_reference(x, *raw_params))
    max_err = float(jnp.max(jnp.abs(out - ref)))
    assert max_err < 5e-2, f"max abs error vs reference: {max_err}"

    print("KERNEL_OK")
</pallas_src>

<mosaic_0001>
module attributes {stable_mosaic.version = 11 : i64} {
  func.func @decoder_kernel(%arg0: memref<32x256xbf16, #tpu.memory_space<vmem>>, %arg1: memref<256x512xbf16, #tpu.memory_space<vmem>>, %arg2: memref<1x128xf32, #tpu.memory_space<vmem>>, %arg3: memref<1x128xf32, #tpu.memory_space<vmem>>, %arg4: memref<256x128xf32, #tpu.memory_space<vmem>>, %arg5: memref<1x64xf32, #tpu.memory_space<vmem>>, %arg6: memref<1x64xf32, #tpu.memory_space<vmem>>, %arg7: memref<128x256xf32, #tpu.memory_space<vmem>>, %arg8: memref<1x128xf32, #tpu.memory_space<vmem>>, %arg9: memref<128x128xf32, #tpu.memory_space<vmem>>, %arg10: memref<128x128xbf16, #tpu.memory_space<vmem>>) attributes {dimension_semantics = [], scalar_prefetch = 0 : i64, scratch_operands = 1 : i64, tpu.core_type = #tpu.core_type<tc>} {
    %c0 = arith.constant 0 : index
    %c0_0 = arith.constant 0 : index
    %0 = vector.load %arg0[%c0, %c0_0] : memref<32x256xbf16, #tpu.memory_space<vmem>>, vector<32x256xbf16>
    %c0_1 = arith.constant 0 : index
    %c0_2 = arith.constant 0 : index
    %1 = vector.load %arg1[%c0_1, %c0_2] : memref<256x512xbf16, #tpu.memory_space<vmem>>, vector<256x512xbf16>
    %cst = arith.constant dense<0.000000e+00> : vector<32x512xf32>
    %2 = tpu.matmul %0, %1, %cst {dimension_numbers = #tpu.dot_dimension_numbers<[1], [0], [0], [1], [0, 0, 1, 1], [], []>} : vector<32x256xbf16>, vector<256x512xbf16>, vector<32x512xf32> -> vector<32x512xf32>
    %cst_3 = arith.constant 0.000000e+00 : f32
    %3 = vector.broadcast %cst_3 : f32 to vector<32x512xf32>
    %4 = arith.maximumf %2, %3 : vector<32x512xf32>
    %cst_4 = arith.constant 0.000000e+00 : f32
    %5 = vector.broadcast %cst_4 : f32 to vector<1x128xf32>
    %cst_5 = arith.constant 0.000000e+00 : f32
    %6 = vector.broadcast %cst_5 : f32 to vector<1x128xf32>
    %7 = vector.extract_strided_slice %4 {offsets = [0, 0], sizes = [32, 128], strides = [1, 1]} : vector<32x512xf32> to vector<32x128xf32>
    %cst_6 = arith.constant dense<0.000000e+00> : vector<128xf32>
    %8 = vector.multi_reduction <add>, %7, %cst_6 [0] : vector<32x128xf32> to vector<128xf32>
    %9 = vector.shape_cast %8 : vector<128xf32> to vector<1x128xf32>
    %10 = arith.addf %5, %9 : vector<1x128xf32>
    %11 = arith.mulf %7, %7 : vector<32x128xf32>
    %cst_7 = arith.constant dense<0.000000e+00> : vector<128xf32>
    %12 = vector.multi_reduction <add>, %11, %cst_7 [0] : vector<32x128xf32> to vector<128xf32>
    %13 = vector.shape_cast %12 : vector<128xf32> to vector<1x128xf32>
    %14 = arith.addf %6, %13 : vector<1x128xf32>
    %15 = arith.truncf %7 : vector<32x128xf32> to vector<32x128xbf16>
    %c0_8 = arith.constant 0 : index
    %c0_9 = arith.constant 0 : index
    %16 = vector.load %arg10[%c0_8, %c0_9] : memref<128x128xbf16, #tpu.memory_space<vmem>>, vector<32x128xbf16>
    tpu.vector_store %arg10[%c0_8, %c0_9], %15 {strides = array<i32>} : memref<128x128xbf16, #tpu.memory_space<vmem>>, vector<32x128xbf16>,
    %17 = vector.extract_strided_slice %4 {offsets = [0, 128], sizes = [32, 128], strides = [1, 1]} : vector<32x512xf32> to vector<32x128xf32>
    %cst_10 = arith.constant dense<0.000000e+00> : vector<128xf32>
    %18 = vector.multi_reduction <add>, %17, %cst_10 [0] : vector<32x128xf32> to vector<128xf32>
    %19 = vector.shape_cast %18 : vector<128xf32> to vector<1x128xf32>
    %20 = arith.addf %10, %19 : vector<1x128xf32>
    %21 = arith.mulf %17, %17 : vector<32x128xf32>
    %cst_11 = arith.constant dense<0.000000e+00> : vector<128xf32>
    %22 = vector.multi_reduction <add>, %21, %cst_11 [0] : vector<32x128xf32> to vector<128xf32>
    %23 = vector.shape_cast %22 : vector<128xf32> to vector<1x128xf32>
    %24 = arith.addf %14, %23 : vector<1x128xf32>
    %25 = arith.truncf %17 : vector<32x128xf32> to vector<32x128xbf16>
    %c32 = arith.constant 32 : index
    %c0_12 = arith.constant 0 : index
    %26 = vector.load %arg10[%c32, %c0_12] : memref<128x128xbf16, #tpu.memory_space<vmem>>, vector<32x128xbf16>
    tpu.vector_store %arg10[%c32, %c0_12], %25 {strides = array<i32>} : memref<128x128xbf16, #tpu.memory_space<vmem>>, vector<32x128xbf16>,
    %27 = vector.extract_strided_slice %4 {offsets = [0, 256], sizes = [32, 128], strides = [1, 1]} : vector<32x512xf32> to vector<32x128xf32>
    %cst_13 = arith.constant dense<0.000000e+00> : vector<128xf32>
    %28 = vector.multi_reduction <add>, %27, %cst_13 [0] : vector<32x128xf32> to vector<128xf32>
    %29 = vector.shape_cast %28 : vector<128xf32> to vector<1x128xf32>
    %30 = arith.addf %20, %29 : vector<1x128xf32>
    %31 = arith.mulf %27, %27 : vector<32x128xf32>
    %cst_14 = arith.constant dense<0.000000e+00> : vector<128xf32>
    %32 = vector.multi_reduction <add>, %31, %cst_14 [0] : vector<32x128xf32> to vector<128xf32>
    %33 = vector.shape_cast %32 : vector<128xf32> to vector<1x128xf32>
    %34 = arith.addf %24, %33 : vector<1x128xf32>
    %35 = arith.truncf %27 : vector<32x128xf32> to vector<32x128xbf16>
    %c64 = arith.constant 64 : index
    %c0_15 = arith.constant 0 : index
    %36 = vector.load %arg10[%c64, %c0_15] : memref<128x128xbf16, #tpu.memory_space<vmem>>, vector<32x128xbf16>
    tpu.vector_store %arg10[%c64, %c0_15], %35 {strides = array<i32>} : memref<128x128xbf16, #tpu.memory_space<vmem>>, vector<32x128xbf16>,
    %37 = vector.extract_strided_slice %4 {offsets = [0, 384], sizes = [32, 128], strides = [1, 1]} : vector<32x512xf32> to vector<32x128xf32>
    %cst_16 = arith.constant dense<0.000000e+00> : vector<128xf32>
    %38 = vector.multi_reduction <add>, %37, %cst_16 [0] : vector<32x128xf32> to vector<128xf32>
    %39 = vector.shape_cast %38 : vector<128xf32> to vector<1x128xf32>
    %40 = arith.addf %30, %39 : vector<1x128xf32>
    %41 = arith.mulf %37, %37 : vector<32x128xf32>
    %cst_17 = arith.constant dense<0.000000e+00> : vector<128xf32>
    %42 = vector.multi_reduction <add>, %41, %cst_17 [0] : vector<32x128xf32> to vector<128xf32>
    %43 = vector.shape_cast %42 : vector<128xf32> to vector<1x128xf32>
    %44 = arith.addf %34, %43 : vector<1x128xf32>
    %45 = arith.truncf %37 : vector<32x128xf32> to vector<32x128xbf16>
    %c96 = arith.constant 96 : index
    %c0_18 = arith.constant 0 : index
    %46 = vector.load %arg10[%c96, %c0_18] : memref<128x128xbf16, #tpu.memory_space<vmem>>, vector<32x128xbf16>
    tpu.vector_store %arg10[%c96, %c0_18], %45 {strides = array<i32>} : memref<128x128xbf16, #tpu.memory_space<vmem>>, vector<32x128xbf16>,
    %cst_19 = arith.constant 1.280000e+02 : f32
    %47 = vector.broadcast %cst_19 : f32 to vector<1x128xf32>
    %48 = arith.divf %40, %47 : vector<1x128xf32>
    %cst_20 = arith.constant 1.280000e+02 : f32
    %49 = vector.broadcast %cst_20 : f32 to vector<1x128xf32>
    %50 = arith.divf %44, %49 : vector<1x128xf32>
    %51 = arith.mulf %48, %48 : vector<1x128xf32>
    %52 = arith.subf %50, %51 : vector<1x128xf32>
    %cst_21 = arith.constant 0.000000e+00 : f32
    %53 = vector.broadcast %cst_21 : f32 to vector<1x128xf32>
    %54 = arith.maximumf %52, %53 : vector<1x128xf32>
    %c0_22 = arith.constant 0 : index
    %c0_23 = arith.constant 0 : index
    %55 = vector.load %arg2[%c0_22, %c0_23] : memref<1x128xf32, #tpu.memory_space<vmem>>, vector<1x128xf32>
    %cst_24 = arith.constant 9.99999974E-6 : f32
    %56 = vector.broadcast %cst_24 : f32 to vector<1x128xf32>
    %57 = arith.addf %54, %56 : vector<1x128xf32>
    %58 = math.rsqrt %57 : vector<1x128xf32>
    %59 = arith.mulf %55, %58 : vector<1x128xf32>
    %c0_25 = arith.constant 0 : index
    %c0_26 = arith.constant 0 : index
    %60 = vector.load %arg3[%c0_25, %c0_26] : memref<1x128xf32, #tpu.memory_space<vmem>>, vector<1x128xf32>
    %61 = arith.mulf %48, %59 : vector<1x128xf32>
    %62 = arith.subf %60, %61 : vector<1x128xf32>
    %c0_27 = arith.constant 0 : index
    %c0_28 = arith.constant 0 : index
    %63 = vector.load %arg4[%c0_27, %c0_28] : memref<256x128xf32, #tpu.memory_space<vmem>>, vector<256x128xf32>
    %64 = vector.broadcast %59 : vector<1x128xf32> to vector<256x128xf32>
    %65 = arith.mulf %63, %64 : vector<256x128xf32>
    %66 = arith.truncf %65 : vector<256x128xf32> to vector<256x128xbf16>
    %67 = vector.shape_cast %62 : vector<1x128xf32> to vector<1x128xf32>
    %68 = vector.broadcast %67 : vector<1x128xf32> to vector<8x128xf32>
    %c0_29 = arith.constant 0 : index
    %c0_30 = arith.constant 0 : index
    %69 = vector.load %arg4[%c0_29, %c0_30] : memref<256x128xf32, #tpu.memory_space<vmem>>, vector<256x128xf32>
    %cst_31 = arith.constant dense<0.000000e+00> : vector<8x256xf32>
    %70 = tpu.matmul %68, %69, %cst_31 {dimension_numbers = #tpu.dot_dimension_numbers<[1], [1], [0], [0], [0, 0, 1, 0], [], []>} : vector<8x128xf32>, vector<256x128xf32>, vector<8x256xf32> -> vector<8x256xf32>
    %71 = vector.extract_strided_slice %70 {offsets = [0, 0], sizes = [1, 256], strides = [1, 1]} : vector<8x256xf32> to vector<1x256xf32>
    %c0_32 = arith.constant 0 : index
    %c0_33 = arith.constant 0 : index
    %72 = vector.load %arg10[%c0_32, %c0_33] : memref<128x128xbf16, #tpu.memory_space<vmem>>, vector<128x128xbf16>
    %cst_34 = arith.constant dense<0.000000e+00> : vector<128x256xf32>
    %73 = tpu.matmul %72, %66, %cst_34 {dimension_numbers = #tpu.dot_dimension_numbers<[1], [1], [0], [0], [0, 0, 1, 0], [], []>} : vector<128x128xbf16>, vector<256x128xbf16>, vector<128x256xf32> -> vector<128x256xf32>
    %74 = vector.broadcast %71 : vector<1x256xf32> to vector<128x256xf32>
    %75 = arith.addf %73, %74 : vector<128x256xf32>
    %cst_35 = arith.constant 0.000000e+00 : f32
    %76 = vector.broadcast %cst_35 : f32 to vector<128x256xf32>
    %77 = arith.maximumf %75, %76 : vector<128x256xf32>
    %cst_36 = arith.constant dense<0.000000e+00> : vector<256xf32>
    %78 = vector.multi_reduction <add>, %77, %cst_36 [0] : vector<128x256xf32> to vector<256xf32>
    %79 = vector.shape_cast %78 : vector<256xf32> to vector<1x256xf32>
    %80 = arith.mulf %77, %77 : vector<128x256xf32>
    %cst_37 = arith.constant dense<0.000000e+00> : vector<256xf32>
    %81 = vector.multi_reduction <add>, %80, %cst_37 [0] : vector<128x256xf32> to vector<256xf32>
    %82 = vector.shape_cast %81 : vector<256xf32> to vector<1x256xf32>
    %83 = vector.extract_strided_slice %79 {offsets = [0, 0], sizes = [1, 64], strides = [1, 1]} : vector<1x256xf32> to vector<1x64xf32>
    %84 = vector.extract_strided_slice %79 {offsets = [0, 64], sizes = [1, 64], strides = [1, 1]} : vector<1x256xf32> to vector<1x64xf32>
    %85 = arith.addf %83, %84 : vector<1x64xf32>
    %86 = vector.extract_strided_slice %79 {offsets = [0, 128], sizes = [1, 64], strides = [1, 1]} : vector<1x256xf32> to vector<1x64xf32>
    %87 = arith.addf %85, %86 : vector<1x64xf32>
    %88 = vector.extract_strided_slice %79 {offsets = [0, 192], sizes = [1, 64], strides = [1, 1]} : vector<1x256xf32> to vector<1x64xf32>
    %89 = arith.addf %87, %88 : vector<1x64xf32>
    %90 = vector.extract_strided_slice %82 {offsets = [0, 0], sizes = [1, 64], strides = [1, 1]} : vector<1x256xf32> to vector<1x64xf32>
    %91 = vector.extract_strided_slice %82 {offsets = [0, 64], sizes = [1, 64], strides = [1, 1]} : vector<1x256xf32> to vector<1x64xf32>
    %92 = arith.addf %90, %91 : vector<1x64xf32>
    %93 = vector.extract_strided_slice %82 {offsets = [0, 128], sizes = [1, 64], strides = [1, 1]} : vector<1x256xf32> to vector<1x64xf32>
    %94 = arith.addf %92, %93 : vector<1x64xf32>
    %95 = vector.extract_strided_slice %82 {offsets = [0, 192], sizes = [1, 64], strides = [1, 1]} : vector<1x256xf32> to vector<1x64xf32>
    %96 = arith.addf %94, %95 : vector<1x64xf32>
    %cst_38 = arith.constant 5.120000e+02 : f32
    %97 = vector.broadcast %cst_38 : f32 to vector<1x64xf32>
    %98 = arith.divf %89, %97 : vector<1x64xf32>
    %cst_39 = arith.constant 5.120000e+02 : f32
    %99 = vector.broadcast %cst_39 : f32 to vector<1x64xf32>
    %100 = arith.divf %96, %99 : vector<1x64xf32>
    %101 = arith.mulf %98, %98 : vector<1x64xf32>
    %102 = arith.subf %100, %101 : vector<1x64xf32>
    %cst_40 = arith.constant 0.000000e+00 : f32
    %103 = vector.broadcast %cst_40 : f32 to vector<1x64xf32>
    %104 = arith.maximumf %102, %103 : vector<1x64xf32>
    %c0_41 = arith.constant 0 : index
    %c0_42 = arith.constant 0 : index
    %105 = vector.load %arg5[%c0_41, %c0_42] : memref<1x64xf32, #tpu.memory_space<vmem>>, vector<1x64xf32>
    %cst_43 = arith.constant 9.99999974E-6 : f32
    %106 = vector.broadcast %cst_43 : f32 to vector<1x64xf32>
    %107 = arith.addf %104, %106 : vector<1x64xf32>
    %108 = math.rsqrt %107 : vector<1x64xf32>
    %109 = arith.mulf %105, %108 : vector<1x64xf32>
    %c0_44 = arith.constant 0 : index
    %c0_45 = arith.constant 0 : index
    %110 = vector.load %arg6[%c0_44, %c0_45] : memref<1x64xf32, #tpu.memory_space<vmem>>, vector<1x64xf32>
    %111 = arith.mulf %98, %109 : vector<1x64xf32>
    %112 = arith.subf %110, %111 : vector<1x64xf32>
    %113 = tpu.concatenate %109, %109, %109, %109 in 1 : vector<1x64xf32>, vector<1x64xf32>, vector<1x64xf32>, vector<1x64xf32> -> vector<1x256xf32>
    %114 = tpu.concatenate %112, %112, %112, %112 in 1 : vector<1x64xf32>, vector<1x64xf32>, vector<1x64xf32>, vector<1x64xf32> -> vector<1x256xf32>
    %c0_46 = arith.constant 0 : index
    %c0_47 = arith.constant 0 : index
    %115 = vector.load %arg7[%c0_46, %c0_47] : memref<128x256xf32, #tpu.memory_space<vmem>>, vector<128x256xf32>
    %116 = vector.broadcast %113 : vector<1x256xf32> to vector<128x256xf32>
    %117 = arith.mulf %115, %116 : vector<128x256xf32>
    %118 = arith.truncf %117 : vector<128x256xf32> to vector<128x256xbf16>
    %c0_48 = arith.constant 0 : index
    %c0_49 = arith.constant 0 : index
    %119 = vector.load %arg8[%c0_48, %c0_49] : memref<1x128xf32, #tpu.memory_space<vmem>>, vector<1x128xf32>
    %120 = vector.shape_cast %114 : vector<1x256xf32> to vector<1x256xf32>
    %121 = vector.broadcast %120 : vector<1x256xf32> to vector<8x256xf32>
    %c0_50 = arith.constant 0 : index
    %c0_51 = arith.constant 0 : index
    %122 = vector.load %arg7[%c0_50, %c0_51] : memref<128x256xf32, #tpu.memory_space<vmem>>, vector<128x256xf32>
    %cst_52 = arith.constant dense<0.000000e+00> : vector<8x128xf32>
    %123 = tpu.matmul %121, %122, %cst_52 {dimension_numbers = #tpu.dot_dimension_numbers<[1], [1], [0], [0], [0, 0, 1, 0], [], []>} : vector<8x256xf32>, vector<128x256xf32>, vector<8x128xf32> -> vector<8x128xf32>
    %124 = vector.extract_strided_slice %123 {offsets = [0, 0], sizes = [1, 128], strides = [1, 1]} : vector<8x128xf32> to vector<1x128xf32>
    %125 = arith.addf %119, %124 : vector<1x128xf32>
    %126 = arith.truncf %77 : vector<128x256xf32> to vector<128x256xbf16>
    %cst_53 = arith.constant dense<0.000000e+00> : vector<128x128xf32>
    %127 = tpu.matmul %126, %118, %cst_53 {dimension_numbers = #tpu.dot_dimension_numbers<[1], [1], [0], [0], [0, 0, 1, 0], [], []>} : vector<128x256xbf16>, vector<128x256xbf16>, vector<128x128xf32> -> vector<128x128xf32>
    %128 = vector.broadcast %125 : vector<1x128xf32> to vector<128x128xf32>
    %129 = arith.addf %127, %128 : vector<128x128xf32>
    %130 = math.tanh %129 : vector<128x128xf32>
    %c0_54 = arith.constant 0 : index
    %c0_55 = arith.constant 0 : index
    %131 = vector.load %arg9[%c0_54, %c0_55] : memref<128x128xf32, #tpu.memory_space<vmem>>, vector<128x128xf32>
    tpu.vector_store %arg9[%c0_54, %c0_55], %130 {strides = array<i32>} : memref<128x128xf32, #tpu.memory_space<vmem>>, vector<128x128xf32>,
    return
  }
}

</mosaic_0001>

<bundles_post_ra>
// kernel: decoder_forward.1
= control target key start
LH: loop header
LB: loop body
LE: loop exit
PB: predicated region body
PF: predicated region fallthrough
CT: control target
= control target key end

     0   :  { %14 = vsyncpa [#allocation4], 0  ;;  %s3070_s0 = inlined_call_operand.vmem [shape: bf16[32,256], index: 0, kind: input, shape index: {}]   ;;  %s3071_s1 = inlined_call_operand.hbm [shape: bf16[256,512], index: 1, kind: input, shape index: {}]   ;;  %s3072_s2 = inlined_call_operand.hbm [shape: f32[1,128], index: 2, kind: input, shape index: {}]   ;;  %s3073_s3 = inlined_call_operand.hbm [shape: f32[1,128], index: 3, kind: input, shape index: {}]   ;;  %s3074_s4 = inlined_call_operand.hbm [shape: f32[256,128], index: 4, kind: input, shape index: {}]   ;;  %s3075_s5 = inlined_call_operand.hbm [shape: f32[1,64], index: 5, kind: input, shape index: {}]   ;;  %s3076_s6 = inlined_call_operand.hbm [shape: f32[1,64], index: 6, kind: input, shape index: {}]   ;;  %s3077_s7 = inlined_call_operand.hbm [shape: f32[128,256], index: 7, kind: input, shape index: {}]   ;;  %s3078_s8 = inlined_call_operand.hbm [shape: f32[1,128], index: 8, kind: input, shape index: {}]   ;;  %s3079_s9 = inlined_call_operand.vmem [shape: f32[128,128], index: 9, kind: output, shape index: {}]  }
   0x1   :  { %15 = vsyncpa [#allocation6], 0 }
   0x2   :  { %16 = vsyncpa [#allocation9], 0 }
   0x3   :  { %17 = vsyncpa [#allocation12], 0 }
   0x4   :  { %18 = vsyncpa [#allocation15], 0  ;;  %s2271_s30 = smov [#allocation5]   ;;  %s2272_s11 = smov [#allocation8]  }
   0x5   :  { %s39_s10 = sshll.u32 %s2271_s30, 4  ;;  %s58_s12 = sshll.u32 %s2272_s11, 4  ;;  %s40_s10 = int_to_ptr.vmem [resolvable:$true] %s39_s10  ;;  %s59_s12 = int_to_ptr.vmem [resolvable:$true] %s58_s12 }
   0x6   :  { %s2109_s13 = scalar_lea.vmem %s40_s10, 16  ;;  %s2113_s14 = scalar_lea.vmem %s40_s10, 32 }
   0x7   :  { %p2110_p0 = scmp.ne.s32.totalorder %s40_s10, %s2109_s13  ;;  %p2114_p1 = scmp.lt.s32.totalorder %s40_s10, %s40_s10 }
   0x8   :  { %p2115_p2 = scmp.lt.s32.totalorder %s2113_s14, %s2109_s13 }
   0xa   :  { %p2116_p3 = por %p2115_p2, %p2114_p1 }
   0xc   :  { %p2117_p4 = pnand %p2116_p3, %p2110_p0 }
   0xe   :  { %2120 = shalt.err (!%p2117_p4)
}
   0xf   :  { %42 = dma.hbm_to_vmem [thread:$0]  %s3072_s2, 16, %s40_s10, [#allocation6]  }
  0x10   :  { %s2129_s17 = scalar_lea.vmem %s59_s12, 4096  ;;  %p2134_p6 = scmp.lt.s32.totalorder %s59_s12, %s59_s12 }
  0x11   :  { %p2130_p5 = scmp.ne.s32.totalorder %s59_s12, %s2129_s17  ;;  %p2135_p7 = scmp.lt.s32.totalorder %s2129_s17, %s2129_s17 }
  0x13   :  { %p2136_p8 = por %p2135_p7, %p2134_p6 }
  0x15   :  { %p2137_p9 = pnand %p2136_p8, %p2130_p5 }
  0x17   :  { %2140 = shalt.err (!%p2137_p9)
}
  0x18   :  { %s2273_s18 = smov 128   ;;  %s2274_s19 = smov 8  }
  0x19   :  { %64 = dma.hbm_to_vmem [thread:$0]  %s3074_s4, 4096, %s59_s12, [#allocation9], %s2273_s18, %s2273_s18, %s2274_s19  }
  0x1a   :  { %s2275_s22 = smov [#allocation11]   ;;  %s2276_s24 = smov [#allocation3]  }
  0x1b   :  { %s81_s23 = sshll.u32 %s2275_s22, 4  ;;  %s26_s25 = sshll.u32 %s2276_s24, 4  ;;  %s82_s23 = int_to_ptr.vmem [resolvable:$true] %s81_s23  ;;  %s27_s25 = int_to_ptr.vmem [resolvable:$true] %s26_s25 }
  0x1c   :  { %s2149_s2 = scalar_lea.vmem %s82_s23, 16  ;;  %s2153_s26 = scalar_lea.vmem %s82_s23, 32 }
  0x1d   :  { %p2150_p10 = scmp.ne.s32.totalorder %s82_s23, %s2149_s2  ;;  %p2154_p11 = scmp.lt.s32.totalorder %s82_s23, %s82_s23 }
  0x1e   :  { %p2155_p12 = scmp.lt.s32.totalorder %s2153_s26, %s2149_s2 }
  0x20   :  { %p2156_p13 = por %p2155_p12, %p2154_p11 }
  0x22   :  { %p2157_p0 = pnand %p2156_p13, %p2150_p10 }
  0x24   :  { %2160 = shalt.err (!%p2157_p0)
}
  0x25   :  { %84 = dma.hbm_to_vmem [thread:$0]  %s3076_s6, 16, %s82_s23, [#allocation12]  }
  0x26   :  { %s2169_s29 = scalar_lea.vmem %s27_s25, 8192  ;;  %p2174_p2 = scmp.lt.s32.totalorder %s27_s25, %s27_s25 }
  0x27   :  { %p2170_p1 = scmp.ne.s32.totalorder %s27_s25, %s2169_s29  ;;  %p2175_p3 = scmp.lt.s32.totalorder %s2169_s29, %s2169_s29 }
  0x29   :  { %p2176_p4 = por %p2175_p3, %p2174_p2 }
  0x2b   :  { %p2177_p5 = pnand %p2176_p4, %p2170_p1 }
  0x2d   :  { %2180 = shalt.err (!%p2177_p5)
}
  0x2e   :  { %s2277_s4 = smov 256   ;;  %s2278_s30 = smov 16  }
  0x2f   :  { %32 = dma.hbm_to_vmem [thread:$0]  %s3071_s1, 8192, %s27_s25, [#allocation4], %s2277_s4, %s2277_s4, %s2278_s30  }
  0x30   :  { %s2279_s12 = smov [#allocation7]   ;;  %s2280_s14 = smov [#allocation10]  }
  0x31   :  { %s49_s13 = sshll.u32 %s2279_s12, 4  ;;  %s71_s6 = sshll.u32 %s2280_s14, 4  ;;  %s50_s13 = int_to_ptr.vmem [resolvable:$true] %s49_s13  ;;  %s72_s6 = int_to_ptr.vmem [resolvable:$true] %s71_s6 }
  0x32   :  { %s2189_s15 = scalar_lea.vmem %s50_s13, 16  ;;  %s2193_s16 = scalar_lea.vmem %s50_s13, 32 }
  0x33   :  { %p2190_p6 = scmp.ne.s32.totalorder %s50_s13, %s2189_s15  ;;  %p2194_p7 = scmp.lt.s32.totalorder %s50_s13, %s50_s13 }
  0x34   :  { %p2195_p8 = scmp.lt.s32.totalorder %s2193_s16, %s2189_s15 }
  0x36   :  { %p2196_p9 = por %p2195_p8, %p2194_p7 }
  0x38   :  { %p2197_p10 = pnand %p2196_p9, %p2190_p6 }
  0x3a   :  { %2200 = shalt.err (!%p2197_p10)
}
  0x3b   :  { %52 = dma.hbm_to_vmem [thread:$0]  %s3073_s3, 16, %s50_s13, [#allocation6]  }
  0x3c   :  { %s2209_s19 = scalar_lea.vmem %s72_s6, 16  ;;  %s2213_s1 = scalar_lea.vmem %s72_s6, 32 }
  0x3d   :  { %p2210_p11 = scmp.ne.s32.totalorder %s72_s6, %s2209_s19  ;;  %p2214_p12 = scmp.lt.s32.totalorder %s72_s6, %s72_s6 }
  0x3e   :  { %p2215_p13 = scmp.lt.s32.totalorder %s2213_s1, %s2209_s19 }
  0x40   :  { %p2216_p0 = por %p2215_p13, %p2214_p12 }
  0x42   :  { %p2217_p1 = pnand %p2216_p0, %p2210_p11 }
  0x44   :  { %2220 = shalt.err (!%p2217_p1)
}
  0x45   :  { %74 = dma.hbm_to_vmem [thread:$0]  %s3075_s5, 16, %s72_s6, [#allocation9]  }
  0x46   :  { %s2281_s22 = smov [#allocation13]   ;;  %s2282_s24 = smov [#allocation14]  }
  0x47   :  { %s90_s23 = sshll.u32 %s2281_s22, 4  ;;  %s103_s25 = sshll.u32 %s2282_s24, 4  ;;  %s91_s23 = int_to_ptr.vmem [resolvable:$true] %s90_s23  ;;  %s104_s25 = int_to_ptr.vmem [resolvable:$true] %s103_s25 }
  0x48   :  { %s2229_s2 = scalar_lea.vmem %s91_s23, 4096  ;;  %p2234_p3 = scmp.lt.s32.totalorder %s91_s23, %s91_s23 }
  0x49   :  { %p2230_p2 = scmp.ne.s32.totalorder %s91_s23, %s2229_s2  ;;  %p2235_p4 = scmp.lt.s32.totalorder %s2229_s2, %s2229_s2 }
  0x4b   :  { %p2236_p5 = por %p2235_p4, %p2234_p3 }
  0x4d   :  { %p2237_p6 = pnand %p2236_p5, %p2230_p2 }
  0x4f   :  { %2240 = shalt.err (!%p2237_p6)
}
  0x50   :  { %96 = dma.hbm_to_vmem [thread:$0]  %s3077_s7, 4096, %s91_s23, [#allocation12], %s2277_s4, %s2277_s4, %s2278_s30  }
  0x51   :  { %s2249_s5 = scalar_lea.vmem %s104_s25, 16  ;;  %s2253_s27 = scalar_lea.vmem %s104_s25, 32 }
  0x52   :  { %p2250_p7 = scmp.ne.s32.totalorder %s104_s25, %s2249_s5  ;;  %p2254_p8 = scmp.lt.s32.totalorder %s104_s25, %s104_s25 }
  0x53   :  { %p2255_p9 = scmp.lt.s32.totalorder %s2253_s27, %s2249_s5 }
  0x55   :  { %p2256_p10 = por %p2255_p9, %p2254_p8 }
  0x57   :  { %p2257_p11 = pnand %p2256_p10, %p2250_p7 }
  0x59   :  { %2260 = shalt.err (!%p2257_p11)
}
  0x5a   :  { %106 = dma.hbm_to_vmem [thread:$0]  %s3078_s8, 16, %s104_s25, [#allocation15]  }
  0x5b   :  { %2261 = dma.done.wait [#allocation4], 8192  }
  0x5c   :  { %2262 = vsyncadd [#allocation4], 4294959104 }
  0x5d   :  { %2263 = dma.done.wait [#allocation6], 32  }
  0x5e   :  { %2264 = vsyncadd [#allocation6], 4294967264 }
  0x5f   :  { %2265 = dma.done.wait [#allocation9], 4112  }
  0x60   :  { %2266 = vsyncadd [#allocation9], 4294963184 }
  0x61   :  { %2267 = dma.done.wait [#allocation12], 4112  }
  0x62   :  { %2268 = vsyncadd [#allocation12], 4294963184 }
  0x63   :  { %2269 = dma.done.wait [#allocation15], 16  }
  0x64   :  { %2270 = vsyncadd [#allocation15], 4294967280  ;;  %v1955_v0 = vld [vmem:[#allocation3 + $0xe4] ss:$16 sps:$4 sm:$0xff]   ;;  %v1957_v1 = vld [vmem:[#allocation3 + $0xec] ss:$16 sps:$4 sm:$0xff]  }
  0x65   :  { %540 = vmatprep.subr.bf16.mxu0 %v1955_v0  ;;  %v1959_v2 = vld [vmem:[#allocation3 + $0xe0] ss:$16 sps:$4 sm:$0xff]   ;;  %v1960_v3 = vld [vmem:[#allocation3 + $0xe8] ss:$16 sps:$4 sm:$0xff]   ;;  %593 = vmatprep.subr.bf16.mxu1 %v1957_v1  ;;  %v1961_v4 = vld [vmem:[#allocation3 + $0xc4] ss:$16 sps:$4 sm:$0xff]  }
  0x66   :  { %541 = vmatpush1.bf16.msra.mxu0 %v1959_v2  ;;  %594 = vmatpush1.bf16.msra.mxu1 %v1960_v3  ;;  %v1963_v5 = vld [vmem:[#allocation3 + $0xcc] ss:$16 sps:$4 sm:$0xff]   ;;  %v1965_v6 = vld [vmem:[#allocation3 + $0xc0] ss:$16 sps:$4 sm:$0xff]   ;;  %v1966_v7 = vld [vmem:[#allocation3 + $0xc8] ss:$16 sps:$4 sm:$0xff]  }
  0x67   :  { %542 = vmatprep.subr.bf16.mxu0 %v1961_v4  ;;  %595 = vmatprep.subr.bf16.mxu1 %v1963_v5  ;;  %v1967_v8 = vld [vmem:[#allocation3 + $0xa4] ss:$16 sps:$4 sm:$0xff]   ;;  %v1969_v9 = vld [vmem:[#allocation3 + $0xac] ss:$16 sps:$4 sm:$0xff]   ;;  %v1971_v10 = vld [vmem:[#allocation3 + $0xa0] ss:$16 sps:$4 sm:$0xff]  }
  0x68   :  { %v1972_v11 = vld [vmem:[#allocation3 + $0xa8] ss:$16 sps:$4 sm:$0xff]   ;;  %v1973_v12 = vld [vmem:[#allocation3 + $0x84] ss:$16 sps:$4 sm:$0xff]   ;;  %v1975_v13 = vld [vmem:[#allocation3 + $0x8c] ss:$16 sps:$4 sm:$0xff]  }
  0x69   :  { %v1977_v14 = vld [vmem:[#allocation3 + $0x80] ss:$16 sps:$4 sm:$0xff]   ;;  %v1978_v15 = vld [vmem:[#allocation3 + $0x88] ss:$16 sps:$4 sm:$0xff]   ;;  %v1979_v16 = vld [vmem:[#allocation3 + $0x64] ss:$16 sps:$4 sm:$0xff]  }
  0x6a   :  { %543 = vmatpush1.bf16.msra.mxu0 %v1965_v6  ;;  %596 = vmatpush1.bf16.msra.mxu1 %v1966_v7  ;;  %v1981_v17 = vld [vmem:[#allocation3 + $0x6c] ss:$16 sps:$4 sm:$0xff]   ;;  %v1983_v18 = vld [vmem:[#allocation3 + $0x60] ss:$16 sps:$4 sm:$0xff]   ;;  %v1984_v19 = vld [vmem:[#allocation3 + $0x68] ss:$16 sps:$4 sm:$0xff]  }
  0x6b   :  { %544 = vmatprep.subr.bf16.mxu0 %v1967_v8  ;;  %597 = vmatprep.subr.bf16.mxu1 %v1969_v9  ;;  %v1985_v20 = vld [vmem:[#allocation3 + $0x44] ss:$16 sps:$4 sm:$0xff]   ;;  %v1987_v21 = vld [vmem:[#allocation3 + $0x4c] ss:$16 sps:$4 sm:$0xff]   ;;  %v1989_v22 = vld [vmem:[#allocation3 + $0x40] ss:$16 sps:$4 sm:$0xff]  }
  0x6c   :  { %v1990_v23 = vld [vmem:[#allocation3 + $0x48] ss:$16 sps:$4 sm:$0xff]   ;;  %v1991_v24 = vld [vmem:[#allocation3 + $0x24] ss:$16 sps:$4 sm:$0xff]   ;;  %v1993_v25 = vld [vmem:[#allocation3 + $0x2c] ss:$16 sps:$4 sm:$0xff]  }
  0x6d   :  { %v1995_v26 = vld [vmem:[#allocation3 + $0x20] ss:$16 sps:$4 sm:$0xff]   ;;  %v1996_v27 = vld [vmem:[#allocation3 + $0x28] ss:$16 sps:$4 sm:$0xff]   ;;  %v1997_v28 = vld [vmem:[#allocation3 + $0x4] ss:$16 sps:$4 sm:$0xff]  }
  0x6e   :  { %545 = vmatpush1.bf16.msra.mxu0 %v1971_v10  ;;  %598 = vmatpush1.bf16.msra.mxu1 %v1972_v11  ;;  %v1999_v29 = vld [vmem:[#allocation3 + $0xc] ss:$16 sps:$4 sm:$0xff]   ;;  %v2001_v30 = vld [vmem:[#allocation3] ss:$16 sps:$4 sm:$0xff]   ;;  %v2002_v31 = vld [vmem:[#allocation3 + $0x8] ss:$16 sps:$4 sm:$0xff]  }
  0x6f   :  { %546 = vmatprep.subr.bf16.mxu0 %v1973_v12  ;;  %599 = vmatprep.subr.bf16.mxu1 %v1975_v13  ;;  %v2003_v32 = vld [vmem:[#allocation3 + $0x1e4] ss:$16 sps:$4 sm:$0xff]   ;;  %v2005_v33 = vld [vmem:[#allocation3 + $0x1ec] ss:$16 sps:$4 sm:$0xff]   ;;  %v2007_v34 = vld [vmem:[#allocation3 + $0x1e0] ss:$16 sps:$4 sm:$0xff]  }
  0x70   :  { %v2008_v35 = vld [vmem:[#allocation3 + $0x1e8] ss:$16 sps:$4 sm:$0xff]   ;;  %v2009_v36 = vld [vmem:[#allocation3 + $0x1c4] ss:$16 sps:$4 sm:$0xff]   ;;  %v2011_v37 = vld [vmem:[#allocation3 + $0x1cc] ss:$16 sps:$4 sm:$0xff]  }
  0x71   :  { %v2013_v38 = vld [vmem:[#allocation3 + $0x1c0] ss:$16 sps:$4 sm:$0xff]   ;;  %v2014_v39 = vld [vmem:[#allocation3 + $0x1c8] ss:$16 sps:$4 sm:$0xff]   ;;  %v2015_v40 = vld [vmem:[#allocation3 + $0x1a4] ss:$16 sps:$4 sm:$0xff]  }
  0x72   :  { %547 = vmatpush1.bf16.msra.mxu0 %v1977_v14  ;;  %600 = vmatpush1.bf16.msra.mxu1 %v1978_v15  ;;  %v2017_v41 = vld [vmem:[#allocation3 + $0x1ac] ss:$16 sps:$4 sm:$0xff]   ;;  %v2019_v42 = vld [vmem:[#allocation3 + $0x1a0] ss:$16 sps:$4 sm:$0xff]   ;;  %v2020_v43 = vld [vmem:[#allocation3 + $0x1a8] ss:$16 sps:$4 sm:$0xff]  }
  0x73   :  { %548 = vmatprep.subr.bf16.mxu0 %v1979_v16  ;;  %601 = vmatprep.subr.bf16.mxu1 %v1981_v17  ;;  %v2021_v44 = vld [vmem:[#allocation3 + $0x184] ss:$16 sps:$4 sm:$0xff]   ;;  %v2023_v45 = vld [vmem:[#allocation3 + $0x18c] ss:$16 sps:$4 sm:$0xff]   ;;  %v2025_v46 = vld [vmem:[#allocation3 + $0x180] ss:$16 sps:$4 sm:$0xff]  }
  0x74   :  { %v2053_v47 = vld [vmem:[%s3070_s0 + $0x4] ss:$8 sps:$4 sm:$0xff]   ;;  %v2026_v48 = vld [vmem:[#allocation3 + $0x188] ss:$16 sps:$4 sm:$0xff]   ;;  %v2031_v51 = vld [vmem:[#allocation3 + $0x160] ss:$16 sps:$4 sm:$0xff]  }
  0x75   :  { %v2027_v49 = vld [vmem:[#allocation3 + $0x164] ss:$16 sps:$4 sm:$0xff]   ;;  %v2029_v50 = vld [vmem:[#allocation3 + $0x16c] ss:$16 sps:$4 sm:$0xff]   ;;  %572 = vmatprep.mubr.bf16.mxu0 %v2053_v47  ;;  %625 = vmatprep.mubr.bf16.mxu1 %v2053_v47  ;;  %v2032_v52 = vld [vmem:[#allocation3 + $0x168] ss:$16 sps:$4 sm:$0xff]  }
  0x76   :  { %549 = vmatpush1.bf16.msra.mxu0 %v1983_v18  ;;  %602 = vmatpush1.bf16.msra.mxu1 %v1984_v19  ;;  %v2033_v53 = vld [vmem:[#allocation3 + $0x144] ss:$16 sps:$4 sm:$0xff]   ;;  %v2035_v54 = vld [vmem:[#allocation3 + $0x14c] ss:$16 sps:$4 sm:$0xff]   ;;  %v2037_v55 = vld [vmem:[#allocation3 + $0x140] ss:$16 sps:$4 sm:$0xff]  }
  0x77   :  { %550 = vmatprep.subr.bf16.mxu0 %v1985_v20  ;;  %603 = vmatprep.subr.bf16.mxu1 %v1987_v21  ;;  %v2038_v56 = vld [vmem:[#allocation3 + $0x148] ss:$16 sps:$4 sm:$0xff]   ;;  %v2039_v57 = vld [vmem:[#allocation3 + $0x124] ss:$16 sps:$4 sm:$0xff]   ;;  %v2041_v58 = vld [vmem:[#allocation3 + $0x12c] ss:$16 sps:$4 sm:$0xff]  }
  0x78   :  { %v2043_v59 = vld [vmem:[#allocation3 + $0x120] ss:$16 sps:$4 sm:$0xff]   ;;  %v2044_v60 = vld [vmem:[#allocation3 + $0x128] ss:$16 sps:$4 sm:$0xff]   ;;  %v2045_v61 = vld [vmem:[#allocation3 + $0x104] ss:$16 sps:$4 sm:$0xff]  }
  0x79   :  { %v2047_v62 = vld [vmem:[#allocation3 + $0x10c] ss:$16 sps:$4 sm:$0xff]   ;;  %v2049_v63 = vld [vmem:[#allocation3 + $0x100] ss:$16 sps:$4 sm:$0xff]   ;;  %v2050_v0 = vld [vmem:[#allocation3 + $0x108] ss:$16 sps:$4 sm:$0xff]  }
  0x7a   :  { %551 = vmatpush1.bf16.msra.mxu0 %v1989_v22  ;;  %604 = vmatpush1.bf16.msra.mxu1 %v1990_v23  ;;  %v2051_v1 = vld [vmem:[%s3070_s0] ss:$8 sps:$4 sm:$0xff]   ;;  %v2054_v2 = vld [vmem:[%s3070_s0 + $0x14] ss:$8 sps:$4 sm:$0xff]   ;;  %v2056_v3 = vld [vmem:[%s3070_s0 + $0x10] ss:$8 sps:$4 sm:$0xff]  }
  0x7b   :  { %552 = vmatprep.subr.bf16.mxu0 %v1991_v24  ;;  %605 = vmatprep.subr.bf16.mxu1 %v1993_v25  ;;  %v2376_v4 = vld [vmem:[#allocation8 + $0xf8] sm:$0xff]  ;;  %v2382_v6 = vld [vmem:[#allocation8 + $0xf0] sm:$0xff]  ;;  %v2388_v8 = vld [vmem:[#allocation8 + $0xe8] sm:$0xff]  ;;  %s2283_s0 = smov 64   ;;  %vm1390_vm0 = vcmask 523264  }
  0x7c   :  { %v2379_v5 = vld [vmem:[#allocation8 + $0x78] sm:$0xff]  ;;  %v2385_v7 = vld [vmem:[#allocation8 + $0x70] sm:$0xff]  ;;  %v2391_v9 = vld [vmem:[#allocation8 + $0x68] sm:$0xff] }
  0x7d   :  { %v2394_v10 = vld [vmem:[#allocation8 + $0xe0] sm:$0xff]  ;;  %v2400_v12 = vld [vmem:[#allocation8 + $0xd8] sm:$0xff]  ;;  %v2406_v14 = vld [vmem:[#allocation8 + $0xd0] sm:$0xff] }
  0x7e   :  { %553 = vmatpush1.bf16.msra.mxu0 %v1995_v26  ;;  %606 = vmatpush1.bf16.msra.mxu1 %v1996_v27  ;;  %v2397_v11 = vld [vmem:[#allocation8 + $0x60] sm:$0xff]  ;;  %v2403_v13 = vld [vmem:[#allocation8 + $0x58] sm:$0xff]  ;;  %v2409_v15 = vld [vmem:[#allocation8 + $0x50] sm:$0xff] }
  0x7f   :  { %554 = vmatprep.subr.bf16.mxu0 %v1997_v28  ;;  %607 = vmatprep.subr.bf16.mxu1 %v1999_v29  ;;  %v2412_v16 = vld [vmem:[#allocation8 + $0xc8] sm:$0xff]  ;;  %v2418_v18 = vld [vmem:[#allocation8 + $0xc0] sm:$0xff]  ;;  %v2424_v20 = vld [vmem:[#allocation8 + $0xb8] sm:$0xff] }
  0x80   :  { %v2415_v17 = vld [vmem:[#allocation8 + $0x48] sm:$0xff]  ;;  %v2421_v19 = vld [vmem:[#allocation8 + $0x40] sm:$0xff]  ;;  %v2427_v21 = vld [vmem:[#allocation8 + $0x38] sm:$0xff] }
  0x81   :  { %v2430_v22 = vld [vmem:[#allocation8 + $0xb0] sm:$0xff]  ;;  %v2436_v24 = vld [vmem:[#allocation8 + $0xa8] sm:$0xff]  ;;  %v2442_v26 = vld [vmem:[#allocation8 + $0xa0] sm:$0xff] }
  0x82   :  { %555 = vmatpush1.bf16.msra.mxu0 %v2001_v30  ;;  %608 = vmatpush1.bf16.msra.mxu1 %v2002_v31  ;;  %v2433_v23 = vld [vmem:[#allocation8 + $0x30] sm:$0xff]  ;;  %v2439_v25 = vld [vmem:[#allocation8 + $0x28] sm:$0xff]  ;;  %v2445_v27 = vld [vmem:[#allocation8 + $0x20] sm:$0xff] }
  0x83   :  { %556 = vmatprep.subr.bf16.mxu0 %v2003_v32  ;;  %609 = vmatprep.subr.bf16.mxu1 %v2005_v33  ;;  %v2448_v28 = vld [vmem:[#allocation8 + $0x98] sm:$0xff]  ;;  %v2454_v30 = vld [vmem:[#allocation8 + $0x90] sm:$0xff]  ;;  %v2460_v32 = vld [vmem:[#allocation8 + $0x88] sm:$0xff] }
  0x84   :  { %v2451_v29 = vld [vmem:[#allocation8 + $0x18] sm:$0xff]  ;;  %v2457_v31 = vld [vmem:[#allocation8 + $0x10] sm:$0xff]  ;;  %3102 = vst [vmem:[#allocation22_spill] sm:$0xff] %v2460_v32  ;;  %v2463_v33 = vld [vmem:[#allocation8 + $0x8] sm:$0xff] }
  0x85   :  { %3101 = vst [vmem:[#allocation21_spill] sm:$0xff] %v2457_v31  ;;  %3103 = vst [vmem:[#allocation23_spill] sm:$0xff] %v2463_v33 }
  0x86   :  { %557 = vmatpush2.bf16.msra.mxu0 %v2007_v34  ;;  %610 = vmatpush2.bf16.msra.mxu1 %v2008_v35  ;;  %v2466_v34 = vld [vmem:[#allocation8 + $0x80] sm:$0xff] }
  0x87   :  { %558 = vmatprep.subr.bf16.mxu0 %v2009_v36  ;;  %611 = vmatprep.subr.bf16.mxu1 %v2011_v37  ;;  %3104 = vst [vmem:[#allocation24_spill] sm:$0xff] %v2466_v34  ;;  %v2469_v35 = vld [vmem:[#allocation8] sm:$0xff] }
  0x88   :  { %3105 = vst [vmem:[#allocation25_spill] sm:$0xff] %v2469_v35 }
  0x8a   :  { %559 = vmatpush2.bf16.msra.mxu0 %v2013_v38  ;;  %612 = vmatpush2.bf16.msra.mxu1 %v2014_v39 }
  0x8b   :  { %560 = vmatprep.subr.bf16.mxu0 %v2015_v40  ;;  %613 = vmatprep.subr.bf16.mxu1 %v2017_v41 }
  0x8e   :  { %561 = vmatpush2.bf16.msra.mxu0 %v2019_v42  ;;  %614 = vmatpush2.bf16.msra.mxu1 %v2020_v43 }
  0x8f   :  { %562 = vmatprep.subr.bf16.mxu0 %v2021_v44  ;;  %615 = vmatprep.subr.bf16.mxu1 %v2023_v45 }
  0x92   :  { %563 = vmatpush2.bf16.msra.mxu0 %v2025_v46  ;;  %616 = vmatpush2.bf16.msra.mxu1 %v2026_v48 }
  0x93   :  { %564 = vmatprep.subr.bf16.mxu0 %v2027_v49  ;;  %617 = vmatprep.subr.bf16.mxu1 %v2029_v50 }
  0x96   :  { %565 = vmatpush2.bf16.msra.mxu0 %v2031_v51  ;;  %618 = vmatpush2.bf16.msra.mxu1 %v2032_v52 }
  0x97   :  { %566 = vmatprep.subr.bf16.mxu0 %v2033_v53  ;;  %619 = vmatprep.subr.bf16.mxu1 %v2035_v54 }
  0x9a   :  { %567 = vmatpush2.bf16.msra.mxu0 %v2037_v55  ;;  %620 = vmatpush2.bf16.msra.mxu1 %v2038_v56 }
  0x9b   :  { %568 = vmatprep.subr.bf16.mxu0 %v2039_v57  ;;  %621 = vmatprep.subr.bf16.mxu1 %v2041_v58 }
  0x9e   :  { %569 = vmatpush2.bf16.msra.mxu0 %v2043_v59  ;;  %622 = vmatpush2.bf16.msra.mxu1 %v2044_v60 }
  0x9f   :  { %570 = vmatprep.subr.bf16.mxu0 %v2045_v61  ;;  %623 = vmatprep.subr.bf16.mxu1 %v2047_v62 }
  0xa2   :  { %571 = vmatpush2.bf16.msra.mxu0 %v2049_v63  ;;  %624 = vmatpush2.bf16.msra.mxu1 %v2050_v0 }
  0xa3   :  { %1876 = vmatprep.subr.mxu0 %v2376_v4 }
  0xa5   :  { %573 = vmatmul.mubr.bf16.vlgmr.msra.gmra.mxu0 %v2051_v1  ;;  %626 = vmatmul.mubr.bf16.vlgmr.msra.gmra.mxu1 %v2051_v1 }
  0xa6   :  { %582 = vmatprep.mubr.bf16.mxu0 %v2054_v2  ;;  %635 = vmatprep.mubr.bf16.mxu1 %v2054_v2 }
  0xa7   :  { %1877 = vmatpush3.xpose.msra.mxu0 %v2379_v5 }
  0xa8   :  { %1878 = vmatprep.subr.mxu0 %v2382_v6 }
  0xab   :  { %1879 = vmatpush3.xpose.msra.mxu0 %v2385_v7 }
  0xac   :  { %1880 = vmatprep.subr.mxu0 %v2388_v8 }
  0xad   :  { %583 = vmatmul.mubr.bf16.gmra.mxu0 %v2056_v3  ;;  %636 = vmatmul.mubr.bf16.gmra.mxu1 %v2056_v3 }
  0xaf   :  { %1881 = vmatpush3.xpose.msra.mxu0 %v2391_v9 }
  0xb0   :  { %1882 = vmatprep.subr.mxu0 %v2394_v10 }
  0xb3   :  { %1883 = vmatpush3.xpose.msra.mxu0 %v2397_v11 }
  0xb4   :  { %1884 = vmatprep.subr.mxu0 %v2400_v12 }
  0xb7   :  { %1885 = vmatpush3.xpose.msra.mxu0 %v2403_v13 }
  0xb8   :  { %1886 = vmatprep.subr.mxu0 %v2406_v14 }
  0xbb   :  { %1887 = vmatpush3.xpose.msra.mxu0 %v2409_v15 }
  0xbc   :  { %1888 = vmatprep.subr.mxu0 %v2412_v16 }
  0xbf   :  { %1889 = vmatpush3.xpose.msra.mxu0 %v2415_v17 }
  0xc0   :  { %1890 = vmatprep.subr.mxu0 %v2418_v18 }
  0xc3   :  { %1891 = vmatpush3.xpose.msra.mxu0 %v2421_v19 }
  0xc4   :  { %1892 = vmatprep.subr.mxu0 %v2424_v20 }
  0xc7   :  { %1893 = vmatpush3.xpose.msra.mxu0 %v2427_v21 }
  0xc8   :  { %1894 = vmatprep.subr.mxu0 %v2430_v22 }
  0xcb   :  { %1895 = vmatpush3.xpose.msra.mxu0 %v2433_v23 }
  0xcc   :  { %1896 = vmatprep.subr.mxu0 %v2436_v24 }
  0xcf   :  { %1897 = vmatpush3.xpose.msra.mxu0 %v2439_v25 }
  0xd0   :  { %1898 = vmatprep.subr.mxu0 %v2442_v26 }
  0xd3   :  { %1899 = vmatpush3.xpose.msra.mxu0 %v2445_v27 }
  0xd4   :  { %1900 = vmatprep.subr.mxu0 %v2448_v28 }
  0xd7   :  { %1901 = vmatpush3.xpose.msra.mxu0 %v2451_v29 }
  0xd8   :  { %1902 = vmatprep.subr.mxu0 %v2454_v30 }
  0xdb   :  { %1903 = vmatpush3.xpose.msra.mxu0 %v2457_v31 }
  0xdc   :  { %1904 = vmatprep.subr.mxu0 %v2460_v32 }
  0xdf   :  { %1905 = vmatpush3.xpose.msra.mxu0 %v2463_v33 }
  0xe0   :  { %1906 = vmatprep.subr.mxu0 %v2466_v34 }
  0xe3   :  { %1907 = vmatpush3.xpose.msra.mxu0 %v2469_v35 }
 0x165   :  { %v574_v36 = vpop.f32.mrf.mxu0  ;;  %v627_v37 = vpop.f32.mrf.mxu1 }
 0x166   :  { %v646_v40 = vmax.f32 %v574_v36, 0.0  ;;  %v648_v41 = vmax.f32 %v627_v37, 0.0 }
 0x167   :  { %v576_v38 = vpop.f32.mrf.mxu0  ;;  %v629_v39 = vpop.f32.mrf.mxu1 }
 0x168   :  { %v647_v44 = vmax.f32 %v576_v38, 0.0  ;;  %v649_v45 = vmax.f32 %v629_v39, 0.0  ;;  %v672_v50 = vmul.f32 %v646_v40, %v646_v40  ;;  %v760_v51 = vmul.f32 %v648_v41, %v648_v41 }
 0x169   :  { %v578_v42 = vpop.f32.mrf.mxu0  ;;  %v631_v43 = vpop.f32.mrf.mxu1 }
 0x16a   :  { %v650_v46 = vmax.f32 %v578_v42, 0.0  ;;  %v652_v47 = vmax.f32 %v631_v43, 0.0  ;;  %v716_v60 = vmul.f32 %v647_v44, %v647_v44  ;;  %v804_v61 = vmul.f32 %v649_v45, %v649_v45 }
 0x16b   :  { %v580_v48 = vpop.f32.mrf.mxu0  ;;  %v633_v49 = vpop.f32.mrf.mxu1 }
 0x16c   :  { %v673_v52 = vmul.f32 %v650_v46, %v650_v46  ;;  %v1832_v53 = vpack.c.bf16 %v650_v46, %v646_v40  ;;  %v761_v54 = vmul.f32 %v652_v47, %v652_v47  ;;  %v1852_v55 = vpack.c.bf16 %v652_v47, %v648_v41 }
 0x16d   :  { %v651_v56 = vmax.f32 %v580_v48, 0.0  ;;  %v653_v57 = vmax.f32 %v633_v49, 0.0  ;;  %v584_v58 = vpop.f32.mrf.mxu0  ;;  %v637_v59 = vpop.f32.mrf.mxu1  ;;  %v662_v0 = vadd.f32 %v650_v46, %v646_v40  ;;  %v750_v1 = vadd.f32 %v652_v47, %v648_v41 }
 0x16e   :  { %1833 = vst [vmem:[#allocation2] sm:$0xff] %v1832_v53   ;;  %v654_v62 = vmax.f32 %v584_v58, 0.0  ;;  %v656_v63 = vmax.f32 %v637_v59, 0.0  ;;  %1872 = vst [vmem:[#allocation2 + $0x20] sm:$0xff] %v1852_v55   ;;  %v676_v38 = vadd.f32 %v673_v52, %v672_v50  ;;  %v764_v39 = vadd.f32 %v761_v54, %v760_v51 }
 0x16f   :  { %v717_v2 = vmul.f32 %v651_v56, %v651_v56  ;;  %v1842_v3 = vpack.c.bf16 %v651_v56, %v647_v44  ;;  %v586_v36 = vpop.f32.mrf.mxu0  ;;  %v639_v37 = vpop.f32.mrf.mxu1  ;;  %v805_v42 = vmul.f32 %v653_v57, %v653_v57  ;;  %v1862_v43 = vpack.c.bf16 %v653_v57, %v649_v45 }
 0x170   :  { %v706_v48 = vadd.f32 %v651_v56, %v647_v44  ;;  %v794_v49 = vadd.f32 %v653_v57, %v649_v45  ;;  %v674_v35 = vmul.f32 %v654_v62, %v654_v62  ;;  %v762_v33 = vmul.f32 %v656_v63, %v656_v63 }
 0x171   :  { %1870 = vst [vmem:[#allocation2 + $0x10] sm:$0xff] %v1842_v3   ;;  %v588_v34 = vpop.f32.mrf.mxu0  ;;  %v641_v53 = vpop.f32.mrf.mxu1  ;;  %1874 = vst [vmem:[#allocation2 + $0x30] sm:$0xff] %v1862_v43   ;;  %v663_v58 = vadd.f32 %v662_v0, %v654_v62  ;;  %v655_v40 = vmax.f32 %v586_v36, 0.0  ;;  %v2472_v41 = vmax.f32 %v639_v37, 0.0  ;;  %v720_v47 = vadd.f32 %v717_v2, %v716_v60 }
 0x172   :  { %v658_v46 = vmax.f32 %v588_v34, 0.0  ;;  %v808_v55 = vadd.f32 %v805_v42, %v804_v61  ;;  %v751_v59 = vadd.f32 %v750_v1, %v656_v63  ;;  %v660_v50 = vmax.f32 %v641_v53, 0.0 }
 0x173   :  { %v677_v51 = vadd.f32 %v676_v38, %v674_v35  ;;  %v765_v52 = vadd.f32 %v764_v39, %v762_v33  ;;  %v718_v54 = vmul.f32 %v655_v40, %v655_v40  ;;  %v806_v44 = vmul.f32 %v2472_v41, %v2472_v41  ;;  %v590_v45 = vpop.f32.mrf.mxu0  ;;  %v643_v0 = vpop.f32.mrf.mxu1 }
 0x174   :  { %v664_v56 = vadd.f32 %v663_v58, %v658_v46  ;;  %v675_v57 = vmul.f32 %v658_v46, %v658_v46  ;;  %v1837_v3 = vpack.c.bf16 %v658_v46, %v654_v62  ;;  %v752_v43 = vadd.f32 %v751_v59, %v660_v50 }
 0x175   :  { %v2476_v36 = vld [vmem:[#allocation2] sm:$0xff]   ;;  %v707_v37 = vadd.f32 %v706_v48, %v655_v40  ;;  %v795_v34 = vadd.f32 %v794_v49, %v2472_v41  ;;  %v763_v60 = vmul.f32 %v660_v50, %v660_v50  ;;  %v1857_v61 = vpack.c.bf16 %v660_v50, %v656_v63 }
 0x176   :  { %v665_v1 = vrot.slane %v664_v56, 4  ;;  %v678_v35 = vadd.f32 %v677_v51, %v675_v57  ;;  %1869 = vst [vmem:[#allocation2 + $0x8] sm:$0xff] %v1837_v3   ;;  %v753_v33 = vrot.slane %v752_v43, 4  ;;  %v659_v2 = vmax.f32 %v590_v45, 0.0  ;;  %1926 = vmatprep.mubr.bf16.mxu1 %v2476_v36 }
 0x177   :  { %v721_v38 = vadd.f32 %v720_v47, %v718_v54  ;;  %v809_v39 = vadd.f32 %v808_v55, %v806_v44  ;;  %v766_v42 = vadd.f32 %v765_v52, %v763_v60  ;;  %1873 = vst [vmem:[#allocation2 + $0x28] sm:$0xff] %v1857_v61   ;;  %v661_v62 = vmax.f32 %v643_v0, 0.0 }
 0x178   :  { %v666_v53 = vadd.f32 %v665_v1, %v664_v56  ;;  %v679_v58 = vrot.slane %v678_v35, 4  ;;  %v754_v46 = vadd.f32 %v753_v33, %v752_v43  ;;  %v708_v48 = vadd.f32 %v707_v37, %v659_v2 }
 0x179   :  { %v767_v59 = vrot.slane %v766_v42, 4  ;;  %v719_v49 = vmul.f32 %v659_v2, %v659_v2  ;;  %v1847_v32 = vpack.c.bf16 %v659_v2, %v655_v40  ;;  %v796_v63 = vadd.f32 %v795_v34, %v661_v62 }
 0x17a   :  { %v667_v50 = vrot.slane %v666_v53, 2  ;;  %v680_v51 = vadd.f32 %v679_v58, %v678_v35  ;;  %v755_v57 = vrot.slane %v754_v46, 2  ;;  %v709_v3 = vrot.slane %v708_v48, 4 }
 0x17b   :  { %v768_v45 = vadd.f32 %v767_v59, %v766_v42  ;;  %v722_v31 = vadd.f32 %v721_v38, %v719_v49  ;;  %1871 = vst [vmem:[#allocation2 + $0x18] sm:$0xff] %v1847_v32   ;;  %v797_v47 = vrot.slane %v796_v63, 4  ;;  %v807_v55 = vmul.f32 %v661_v62, %v661_v62 }
 0x17c   :  { %v668_v52 = vadd.f32 %v667_v50, %v666_v53  ;;  %v681_v54 = vrot.slane %v680_v51, 2  ;;  %v710_v44 = vadd.f32 %v709_v3, %v708_v48  ;;  %v756_v60 = vadd.f32 %v755_v57, %v754_v46 }
 0x17d   :  { %v769_v56 = vrot.slane %v768_v45, 2  ;;  %v723_v0 = vrot.slane %v722_v31, 4  ;;  %v798_v43 = vadd.f32 %v797_v47, %v796_v63  ;;  %v810_v37 = vadd.f32 %v809_v39, %v807_v55 }
 0x17e   :  { %v711_v61 = vrot.slane %v710_v44, 2  ;;  %v682_v40 = vadd.f32 %v681_v54, %v680_v51  ;;  %v669_v33 = vrot.slane %v668_v52, 1  ;;  %v757_v59 = vrot.slane %v756_v60, 1 }
 0x17f   :  { %v724_v34 = vadd.f32 %v723_v0, %v722_v31  ;;  %v799_v1 = vrot.slane %v798_v43, 2  ;;  %v811_v35 = vrot.slane %v810_v37, 4  ;;  %v770_v42 = vadd.f32 %v769_v56, %v768_v45 }
 0x180   :  { %v712_v2 = vadd.f32 %v711_v61, %v710_v44  ;;  %v1867_v48 = vpack.c.bf16 %v661_v62, %v2472_v41  ;;  %v683_v49 = vrot.slane %v682_v40, 1  ;;  %v670_v39 = vadd.f32 %v669_v33, %v668_v52 }
 0x181   :  { %v725_v38 = vrot.slane %v724_v34, 2  ;;  %v800_v32 = vadd.f32 %v799_v1, %v798_v43  ;;  %v812_v58 = vadd.f32 %v811_v35, %v810_v37  ;;  %v771_v31 = vrot.slane %v770_v42, 1 }
 0x182   :  { %v713_v53 = vrot.slane %v712_v2, 1  ;;  %1875 = vst [vmem:[#allocation2 + $0x38] sm:$0xff] %v1867_v48   ;;  %v758_v47 = vadd.f32 %v757_v59, %v756_v60  ;;  %v684_v45 = vadd.f32 %v683_v49, %v682_v40  ;;  %v884_v60 = vlaneseq  ;;  %v844_v40 = vld [vmem:[#allocation5] sm:$0x1] }
 0x183   :  { %v726_v50 = vadd.f32 %v725_v38, %v724_v34  ;;  %v813_v63 = vrot.slane %v812_v58, 2  ;;  %v801_v57 = vrot.slane %v800_v32, 1  ;;  %v772_v43 = vadd.f32 %v771_v31, %v770_v42 }
 0x184   :  { %v714_v46 = vadd.f32 %v713_v53, %v712_v2 }
 0x185   :  { %v727_v51 = vrot.slane %v726_v50, 1  ;;  %v814_v3 = vadd.f32 %v813_v63, %v812_v58  ;;  %v802_v56 = vadd.f32 %v801_v57, %v800_v32  ;;  %v885_v58 = vshrl.u32 %v884_v60, 7 }
 0x186   :  { %v715_v55 = vadd.f32 %v714_v46, %v670_v39  ;;  %v848_v46 = vld [vmem:[#allocation7] sm:$0x1] }
 0x187   :  { %v728_v54 = vadd.f32 %v727_v51, %v726_v50  ;;  %v815_v44 = vrot.slane %v814_v3, 1  ;;  %v2481_v32 = vsub.s32 0, %v885_v58  ;;  %v2058_v58 = vld [vmem:[#allocation2 + $0x8] sm:$0xff]  }
 0x188   :  { %v759_v0 = vadd.f32 %v758_v47, %v715_v55 }
 0x189   :  { %v729_v37 = vadd.f32 %v728_v54, %v684_v45  ;;  %v816_v61 = vadd.f32 %v815_v44, %v814_v3 }
 0x18a   :  { %v803_v41 = vadd.f32 %v802_v56, %v759_v0 }
 0x18b   :  { %v773_v62 = vadd.f32 %v772_v43, %v729_v37 }
 0x18c   :  { %v839_v34 = vmul.f32 0.0078125, %v803_v41 }
 0x18d   :  { %v817_v52 = vadd.f32 %v816_v61, %v773_v62 }
 0x18e   :  { %v841_v1 = vmul.f32 %v839_v34, %v839_v34 }
 0x18f   :  { %v840_v35 = vmul.f32 0.0078125, %v817_v52 }
 0x191   :  { %v842_v33 = vsub.f32 %v840_v35, %v841_v1 }
 0x193   :  { %v843_v2 = vmax.f32 %v842_v33, 0.0 }
 0x195   :  { %v845_v38 = vadd.f32 1e-05, %v843_v2 }
 0x197   :  { %2065 = vrsqrt.f32 %v845_v38  ;;  %v3110_v38 = vld [vmem:[#allocation25_spill] sm:$0xff] }
 0x1a4   :  { %v2066_v59 = vpop.eup %2065 }
 0x1a5   :  { %v847_v53 = vmul.f32 %v2066_v59, %v844_v40  ;;  %v2059_v40 = vld [vmem:[#allocation2 + $0x10] sm:$0xff]   ;;  %v2060_v59 = vld [vmem:[#allocation2 + $0x18] sm:$0xff]  }
 0x1a7   :  { %v2484_v42 = vrot.slane %v847_v53, %v2481_v32  ;;  %v849_v39 = vmul.f32 %v847_v53, %v839_v34  ;;  %v3106_v34 = vld [vmem:[#allocation21_spill] sm:$0xff]  ;;  %v2061_v53 = vld [vmem:[#allocation2 + $0x20] sm:$0xff]  }
 0x1a9   :  { %v903_v48 = vmul.f32 %v2484_v42, %v2385_v7  ;;  %v904_v49 = vmul.f32 %v2484_v42, %v2379_v5  ;;  %v919_v50 = vmul.f32 %v2484_v42, %v2382_v6  ;;  %v920_v63 = vmul.f32 %v2484_v42, %v2376_v4 }
 0x1aa   :  { %v918_v57 = vmul.f32 %v2484_v42, %v2388_v8  ;;  %v917_v31 = vmul.f32 %v2484_v42, %v2394_v10  ;;  %v850_v3 = vsub.f32 %v848_v46, %v849_v39  ;;  %v902_v4 = vmul.f32 %v2484_v42, %v2391_v9 }
 0x1ab   :  { %v928_v51 = vpack.c.bf16 %v904_v49, %v903_v48  ;;  %v936_v7 = vpack.c.bf16 %v920_v63, %v919_v50  ;;  %v901_v6 = vmul.f32 %v2484_v42, %v2397_v11  ;;  %v916_v8 = vmul.f32 %v2484_v42, %v2400_v12  ;;  %v2062_v48 = vld [vmem:[#allocation2 + $0x28] sm:$0xff]   ;;  %v2063_v49 = vld [vmem:[#allocation2 + $0x30] sm:$0xff]  }
 0x1ac   :  { %v941_v47 = vrot.slane %v850_v3, %v2481_v32  ;;  %v935_v5 = vpack.c.bf16 %v918_v57, %v917_v31  ;;  %v915_v10 = vmul.f32 %v2484_v42, %v2406_v14  ;;  %v900_v54 = vmul.f32 %v2484_v42, %v2403_v13 }
 0x1ad   :  { %1910 = vmatprep.subr.bf16.mxu1 %v936_v7  ;;  %v927_v55 = vpack.c.bf16 %v902_v4, %v901_v6  ;;  %v899_v9 = vmul.f32 %v2484_v42, %v2409_v15  ;;  %v914_v11 = vmul.f32 %v2484_v42, %v2412_v16  ;;  %v913_v44 = vmul.f32 %v2484_v42, %v2418_v18 }
 0x1ae   :  { %1911 = vmatpush3.bf16.xpose.msra.mxu1 %v928_v51  ;;  %1908 = vmatprep.mubr.f32.mxu0 %v941_v47  ;;  %v934_v45 = vpack.c.bf16 %v916_v8, %v915_v10  ;;  %v898_v14 = vmul.f32 %v2484_v42, %v2415_v17  ;;  %v897_v0 = vmul.f32 %v2484_v42, %v2421_v19 }
 0x1af   :  { %1912 = vmatprep.subr.bf16.mxu1 %v935_v5  ;;  %1909 = vmatmul.mubr.f32.vlgmr.msra.gmra.mxu0 %v941_v47  ;;  %v926_v12 = vpack.c.bf16 %v900_v54, %v899_v9  ;;  %v933_v56 = vpack.c.bf16 %v914_v11, %v913_v44  ;;  %v912_v13 = vmul.f32 %v2484_v42, %v2424_v20 }
 0x1b0   :  { %v911_v15 = vmul.f32 %v2484_v42, %v2430_v22  ;;  %v925_v16 = vpack.c.bf16 %v898_v14, %v897_v0  ;;  %v896_v18 = vmul.f32 %v2484_v42, %v2427_v21  ;;  %v895_v37 = vmul.f32 %v2484_v42, %v2433_v23 }
 0x1b1   :  { %v910_v17 = vmul.f32 %v2484_v42, %v2436_v24  ;;  %v909_v19 = vmul.f32 %v2484_v42, %v2442_v26  ;;  %v894_v22 = vmul.f32 %v2484_v42, %v2439_v25  ;;  %v893_v62 = vmul.f32 %v2484_v42, %v2445_v27  ;;  %v3107_v25 = vld [vmem:[#allocation22_spill] sm:$0xff]  ;;  %v3108_v27 = vld [vmem:[#allocation24_spill] sm:$0xff] }
 0x1b2   :  { %v932_v43 = vpack.c.bf16 %v912_v13, %v911_v15  ;;  %v924_v20 = vpack.c.bf16 %v896_v18, %v895_v37  ;;  %v908_v21 = vmul.f32 %v2484_v42, %v2448_v28  ;;  %v907_v23 = vmul.f32 %v2484_v42, %v2454_v30  ;;  %v3109_v30 = vld [vmem:[#allocation23_spill] sm:$0xff] }
 0x1b3   :  { %v931_v41 = vpack.c.bf16 %v910_v17, %v909_v19  ;;  %v923_v24 = vpack.c.bf16 %v894_v22, %v893_v62  ;;  %v892_v26 = vmul.f32 %v2484_v42, %v2451_v29  ;;  %v891_v52 = vmul.f32 %v2484_v42, %v3106_v34  ;;  %v2863_v17 = vld [vmem:[#allocation13 + $0x28] sm:$0xff] }
 0x1b4   :  { %v930_v61 = vpack.c.bf16 %v908_v21, %v907_v23  ;;  %v906_v1 = vmul.f32 %v2484_v42, %v3107_v25  ;;  %v905_v35 = vmul.f32 %v2484_v42, %v3108_v27  ;;  %v890_v2 = vmul.f32 %v2484_v42, %v3109_v30 }
 0x1b5   :  { %v922_v28 = vpack.c.bf16 %v892_v26, %v891_v52  ;;  %v889_v60 = vmul.f32 %v2484_v42, %v3110_v38  ;;  %v2064_v42 = vld [vmem:[#allocation2 + $0x38] sm:$0xff]  }
 0x1b6   :  { %1913 = vmatpush3.bf16.xpose.msra.mxu1 %v927_v55  ;;  %v929_v33 = vpack.c.bf16 %v906_v1, %v905_v35  ;;  %v2857_v1 = vld [vmem:[#allocation13 + $0x38] sm:$0xff] }
 0x1b7   :  { %1914 = vmatprep.subr.bf16.mxu1 %v934_v45  ;;  %v921_v29 = vpack.c.bf16 %v890_v2, %v889_v60 }
 0x1be   :  { %1915 = vmatpush3.bf16.xpose.msra.mxu1 %v926_v12 }
 0x1bf   :  { %1916 = vmatprep.subr.bf16.mxu1 %v933_v56 }
 0x1c6   :  { %1917 = vmatpush3.bf16.xpose.msra.mxu1 %v925_v16 }
 0x1c7   :  { %1918 = vmatprep.subr.bf16.mxu1 %v932_v43 }
 0x1ce   :  { %1919 = vmatpush3.bf16.xpose.msra.mxu1 %v924_v20 }
 0x1cf   :  { %1920 = vmatprep.subr.bf16.mxu1 %v931_v41  ;;  %v2867_v41 = vld [vmem:[#allocation13 + $0x20] sm:$0xff] }
 0x1d6   :  { %1921 = vmatpush3.bf16.xpose.msra.mxu1 %v923_v24 }
 0x1d7   :  { %1922 = vmatprep.subr.bf16.mxu1 %v930_v61 }
 0x1de   :  { %1923 = vmatpush3.bf16.xpose.msra.mxu1 %v922_v28 }
 0x1df   :  { %1924 = vmatprep.subr.bf16.mxu1 %v929_v33  ;;  %v2861_v33 = vld [vmem:[#allocation13 + $0x30] sm:$0xff] }
 0x1e6   :  { %1925 = vmatpush3.bf16.xpose.msra.mxu1 %v921_v29 }
 0x1ed   :  { %1927 = vmatmul.mubr.bf16.vlgmr.msra.gmra.mxu1 %v2476_v36 }
 0x1ee   :  { %1928 = vmatprep.mubr.bf16.mxu1 %v2058_v58 }
 0x1f5   :  { %1929 = vmatmul.mubr.bf16.gmra.mxu1 %v2058_v58 }
 0x1f6   :  { %1930 = vmatprep.mubr.bf16.mxu1 %v2059_v40 }
 0x1fd   :  { %1931 = vmatmul.mubr.bf16.gmra.mxu1 %v2059_v40 }
 0x1fe   :  { %1932 = vmatprep.mubr.bf16.mxu1 %v2060_v59 }
 0x205   :  { %1933 = vmatmul.mubr.bf16.gmra.mxu1 %v2060_v59 }
 0x206   :  { %1934 = vmatprep.mubr.bf16.mxu1 %v2061_v53 }
 0x20d   :  { %1935 = vmatmul.mubr.bf16.gmra.mxu1 %v2061_v53 }
 0x20e   :  { %1936 = vmatprep.mubr.bf16.mxu1 %v2062_v48 }
 0x215   :  { %1937 = vmatmul.mubr.bf16.gmra.mxu1 %v2062_v48 }
 0x216   :  { %1938 = vmatprep.mubr.bf16.mxu1 %v2063_v49 }
 0x21d   :  { %1939 = vmatmul.mubr.bf16.gmra.mxu1 %v2063_v49 }
 0x21e   :  { %1940 = vmatprep.mubr.bf16.mxu1 %v2064_v42 }
 0x225   :  { %1941 = vmatmul.mubr.bf16.gmra.mxu1 %v2064_v42 }
 0x26f   :  { %v1009_v36 = vpop.f32.mrf.mxu0 }
 0x270   :  { %v2553_v63 = vrot.slane %v1009_v36, %v2481_v32 }
 0x271   :  { %v1011_v39 = vpop.f32.mrf.mxu0 }
 0x272   :  { %v2557_v31 = vrot.slane %v1011_v39, %v2481_v32 }
 0x2ad   :  { %v1120_v50 = vpop.f32.mrf.mxu1 }
 0x2ae   :  { %v1121_v57 = vadd.f32 %v1120_v50, %v2553_v63 }
 0x2af   :  { %v1122_v46 = vpop.f32.mrf.mxu1 }
 0x2b0   :  { %v1123_v7 = vadd.f32 %v1122_v46, %v2557_v31  ;;  %v2561_v5 = vmax.f32 %v1121_v57, 0.0 }
 0x2b1   :  { %v1124_v51 = vpop.f32.mrf.mxu1 }
 0x2b2   :  { %v1125_v3 = vadd.f32 %v1124_v51, %v2553_v63  ;;  %v1200_v45 = vmax.f32 %v1123_v7, 0.0  ;;  %v1273_v38 = vmul.f32 %v2561_v5, %v2561_v5 }
 0x2b3   :  { %v1126_v47 = vpop.f32.mrf.mxu1 }
 0x2b4   :  { %v2563_v4 = vmax.f32 %v1125_v3, 0.0  ;;  %v1127_v6 = vadd.f32 %v1126_v47, %v2557_v31  ;;  %v1274_v60 = vmul.f32 %v1200_v45, %v1200_v45 }
 0x2b5   :  { %v1130_v8 = vpop.f32.mrf.mxu1 }
 0x2b6   :  { %v1202_v55 = vmax.f32 %v1127_v6, 0.0  ;;  %v1131_v9 = vadd.f32 %v1130_v8, %v2553_v63  ;;  %v1275_v27 = vmul.f32 %v2563_v4, %v2563_v4  ;;  %v1231_v29 = vadd.f32 %v2563_v4, %v2561_v5  ;;  %v2851_v8 = vld [vmem:[#allocation13 + $0x48] sm:$0xff] }
 0x2b7   :  { %v1132_v54 = vpop.f32.mrf.mxu1 }
 0x2b8   :  { %v1562_v44 = vpack.c.bf16 %v1202_v55, %v1200_v45  ;;  %v1133_v56 = vadd.f32 %v1132_v54, %v2557_v31  ;;  %v2574_v15 = vmax.f32 %v1131_v9, 0.0  ;;  %v1276_v30 = vmul.f32 %v1202_v55, %v1202_v55 }
 0x2b9   :  { %v1134_v11 = vpop.f32.mrf.mxu1  ;;  %v1305_v42 = vadd.f32 %v1275_v27, %v1273_v38  ;;  %v1252_v36 = vadd.f32 %v1202_v55, %v1200_v45 }
 0x2ba   :  { %v1135_v12 = vadd.f32 %v1134_v11, %v2553_v63  ;;  %1615 = vmatprep.mubr.bf16.mxu1 %v1562_v44  ;;  %v2578_v18 = vmax.f32 %v1133_v56, 0.0  ;;  %v1277_v59 = vmul.f32 %v2574_v15, %v2574_v15  ;;  %v1326_v46 = vadd.f32 %v1276_v30, %v1274_v60 }
 0x2bb   :  { %v1136_v14 = vpop.f32.mrf.mxu1  ;;  %v1232_v57 = vadd.f32 %v1231_v29, %v2574_v15 }
 0x2bc   :  { %v2571_v0 = vmax.f32 %v1135_v12, 0.0  ;;  %v1137_v13 = vadd.f32 %v1136_v14, %v2557_v31  ;;  %v1278_v53 = vmul.f32 %v2578_v18, %v2578_v18  ;;  %v1306_v55 = vadd.f32 %v1305_v42, %v1277_v59  ;;  %v2855_v14 = vld [vmem:[#allocation13 + $0x40] sm:$0xff] }
 0x2bd   :  { %v1140_v16 = vpop.f32.mrf.mxu1  ;;  %v1253_v45 = vadd.f32 %v1252_v36, %v2578_v18 }
 0x2be   :  { %v2576_v43 = vmax.f32 %v1137_v13, 0.0  ;;  %v1141_v19 = vadd.f32 %v1140_v16, %v2553_v63  ;;  %v1279_v51 = vmul.f32 %v2571_v0, %v2571_v0  ;;  %v1327_v54 = vadd.f32 %v1326_v46, %v1278_v53 }
 0x2bf   :  { %v1142_v37 = vpop.f32.mrf.mxu1  ;;  %v1233_v9 = vadd.f32 %v1232_v57, %v2571_v0 }
 0x2c0   :  { %v1143_v62 = vadd.f32 %v1142_v37, %v2557_v31  ;;  %v2590_v61 = vmax.f32 %v1141_v19, 0.0  ;;  %v1280_v7 = vmul.f32 %v2576_v43, %v2576_v43  ;;  %v1307_v13 = vadd.f32 %v1306_v55, %v1279_v51 }
 0x2c1   :  { %v1144_v20 = vpop.f32.mrf.mxu1  ;;  %v1254_v16 = vadd.f32 %v1253_v45, %v2576_v43 }
 0x2c2   :  { %v1145_v22 = vadd.f32 %v1144_v20, %v2553_v63  ;;  %v2594_v52 = vmax.f32 %v1143_v62, 0.0  ;;  %v1281_v11 = vmul.f32 %v2590_v61, %v2590_v61  ;;  %v1328_v19 = vadd.f32 %v1327_v54, %v1280_v7 }
 0x2c3   :  { %v1146_v21 = vpop.f32.mrf.mxu1  ;;  %v1234_v20 = vadd.f32 %v1233_v9, %v2590_v61 }
 0x2c4   :  { %v2587_v23 = vmax.f32 %v1145_v22, 0.0  ;;  %v1147_v24 = vadd.f32 %v1146_v21, %v2557_v31  ;;  %v1282_v44 = vmul.f32 %v2594_v52, %v2594_v52 }
 0x2c5   :  { %v1150_v26 = vpop.f32.mrf.mxu1 }
 0x2c6   :  { %v2592_v34 = vmax.f32 %v1147_v24, 0.0  ;;  %v1151_v35 = vadd.f32 %v1150_v26, %v2553_v63  ;;  %v1283_v22 = vmul.f32 %v2587_v23, %v2587_v23  ;;  %v1255_v24 = vadd.f32 %v1254_v16, %v2594_v52 }
 0x2c7   :  { %v1152_v25 = vpop.f32.mrf.mxu1  ;;  %v1235_v38 = vadd.f32 %v1234_v20, %v2587_v23 }
 0x2c8   :  { %v1153_v58 = vadd.f32 %v1152_v25, %v2557_v31  ;;  %v2616_v50 = vmax.f32 %v1151_v35, 0.0  ;;  %v1284_v26 = vmul.f32 %v2592_v34, %v2592_v34  ;;  %v1308_v35 = vadd.f32 %v1307_v13, %v1281_v11 }
 0x2c9   :  { %v1154_v28 = vpop.f32.mrf.mxu1  ;;  %v1256_v60 = vadd.f32 %v1255_v24, %v2592_v34 }
 0x2ca   :  { %v1155_v2 = vadd.f32 %v1154_v28, %v2553_v63  ;;  %v2625_v47 = vmax.f32 %v1153_v58, 0.0  ;;  %v1329_v28 = vadd.f32 %v1328_v19, %v1282_v44  ;;  %v1285_v29 = vmul.f32 %v2616_v50, %v2616_v50 }
 0x2cb   :  { %v1156_v40 = vpop.f32.mrf.mxu1 }
 0x2cc   :  { %v2613_v48 = vmax.f32 %v1155_v2, 0.0  ;;  %v1157_v49 = vadd.f32 %v1156_v40, %v2557_v31  ;;  %v1309_v40 = vadd.f32 %v1308_v35, %v1283_v22  ;;  %v1286_v59 = vmul.f32 %v2625_v47, %v2625_v47 }
 0x2cd   :  { %v1160_v39 = vpop.f32.mrf.mxu1  ;;  %v1330_v36 = vadd.f32 %v1329_v28, %v1284_v26  ;;  %v1257_v46 = vadd.f32 %v1256_v60, %v2625_v47 }
 0x2ce   :  { %v2621_v3 = vmax.f32 %v1157_v49, 0.0  ;;  %v1161_v12 = vadd.f32 %v1160_v39, %v2553_v63  ;;  %v1236_v39 = vadd.f32 %v1235_v38, %v2616_v50  ;;  %v1287_v51 = vmul.f32 %v2613_v48, %v2613_v48 }
 0x2cf   :  { %v1162_v6 = vpop.f32.mrf.mxu1  ;;  %v1310_v54 = vadd.f32 %v1309_v40, %v1285_v29  ;;  %v1331_v11 = vadd.f32 %v1330_v36, %v1286_v59 }
 0x2d0   :  { %v1163_v62 = vadd.f32 %v1162_v6, %v2557_v31  ;;  %v2650_v30 = vmax.f32 %v1161_v12, 0.0  ;;  %v1288_v7 = vmul.f32 %v2621_v3, %v2621_v3  ;;  %v1237_v44 = vadd.f32 %v1236_v39, %v2613_v48 }
 0x2d1   :  { %v1164_v56 = vpop.f32.mrf.mxu1  ;;  %v1258_v12 = vadd.f32 %v1257_v46, %v2621_v3  ;;  %v1311_v22 = vadd.f32 %v1310_v54, %v1287_v51 }
 0x2d2   :  { %v1165_v37 = vadd.f32 %v1164_v56, %v2553_v63  ;;  %3112 = vst [vmem:[#allocation22_spill] sm:$0xff] %v2650_v30  ;;  %v2660_v53 = vmax.f32 %v1163_v62, 0.0  ;;  %v1289_v56 = vmul.f32 %v2650_v30, %v2650_v30  ;;  %v1332_v62 = vadd.f32 %v1331_v11, %v1288_v7 }
 0x2d3   :  { %v1166_v21 = vpop.f32.mrf.mxu1  ;;  %v1238_v26 = vadd.f32 %v1237_v44, %v2650_v30 }
 0x2d4   :  { %v2647_v25 = vmax.f32 %v1165_v37, 0.0  ;;  %v1167_v27 = vadd.f32 %v1166_v21, %v2557_v31  ;;  %3114 = vst [vmem:[#allocation23_spill] sm:$0xff] %v2660_v53  ;;  %v1290_v16 = vmul.f32 %v2660_v53, %v2660_v53 }
 0x2d5   :  { %v1170_v2 = vpop.f32.mrf.mxu1 }
 0x2d6   :  { %3111 = vst [vmem:[#allocation21_spill] sm:$0xff] %v2647_v25  ;;  %v2656_v58 = vmax.f32 %v1167_v27, 0.0  ;;  %v1171_v57 = vadd.f32 %v1170_v2, %v2553_v63  ;;  %v1259_v27 = vadd.f32 %v1258_v12, %v2660_v53  ;;  %v1291_v35 = vmul.f32 %v2647_v25, %v2647_v25 }
 0x2d7   :  { %v1172_v49 = vpop.f32.mrf.mxu1  ;;  %v1312_v2 = vadd.f32 %v1311_v22, %v1289_v56  ;;  %v1333_v59 = vadd.f32 %v1332_v62, %v1290_v16 }
 0x2d8   :  { %3113 = vst [vmem:[#allocation24_spill] sm:$0xff] %v2656_v58  ;;  %v1173_v6 = vadd.f32 %v1172_v49, %v2557_v31  ;;  %v2681_v37 = vmax.f32 %v1171_v57, 0.0  ;;  %v1292_v38 = vmul.f32 %v2656_v58, %v2656_v58  ;;  %v1239_v49 = vadd.f32 %v1238_v26, %v2647_v25 }
 0x2d9   :  { %v1174_v55 = vpop.f32.mrf.mxu1  ;;  %v1260_v46 = vadd.f32 %v1259_v27, %v2656_v58  ;;  %v2874_v58 = vld [vmem:[#allocation13 + $0x18] sm:$0xff] }
 0x2da   :  { %v1175_v9 = vadd.f32 %v1174_v55, %v2553_v63  ;;  %3115 = vst [vmem:[#allocation25_spill] sm:$0xff] %v2681_v37  ;;  %v2686_v21 = vmax.f32 %v1173_v6, 0.0  ;;  %v1293_v36 = vmul.f32 %v2681_v37, %v2681_v37  ;;  %v1313_v55 = vadd.f32 %v1312_v2, %v1291_v35 }
 0x2db   :  { %v1176_v13 = vpop.f32.mrf.mxu1  ;;  %v1334_v11 = vadd.f32 %v1333_v59, %v1292_v38  ;;  %v1240_v44 = vadd.f32 %v1239_v49, %v2681_v37 }
 0x2dc   :  { %v2683_v19 = vmax.f32 %v1175_v9, 0.0  ;;  %v1177_v20 = vadd.f32 %v1176_v13, %v2557_v31  ;;  %3117 = vst [vmem:[#allocation27_spill] sm:$0xff] %v2686_v21  ;;  %v1294_v57 = vmul.f32 %v2686_v21, %v2686_v21  ;;  %v1261_v12 = vadd.f32 %v1260_v46, %v2686_v21 }
 0x2dd   :  { %v1180_v24 = vpop.f32.mrf.mxu1  ;;  %v1314_v16 = vadd.f32 %v1313_v55, %v1293_v36 }
 0x2de   :  { %3116 = vst [vmem:[#allocation26_spill] sm:$0xff] %v2683_v19  ;;  %v2692_v28 = vmax.f32 %v1177_v20, 0.0  ;;  %v1181_v60 = vadd.f32 %v1180_v24, %v2553_v63  ;;  %v1295_v54 = vmul.f32 %v2683_v19, %v2683_v19  ;;  %v1335_v24 = vadd.f32 %v1334_v11, %v1294_v57 }
 0x2df   :  { %v1182_v29 = vpop.f32.mrf.mxu1  ;;  %v1241_v35 = vadd.f32 %v1240_v44, %v2683_v19 }
 0x2e0   :  { %3118 = vst [vmem:[#allocation28_spill] sm:$0xff] %v2692_v28  ;;  %v1183_v39 = vadd.f32 %v1182_v29, %v2557_v31  ;;  %v2706_v51 = vmax.f32 %v1181_v60, 0.0  ;;  %v1296_v20 = vmul.f32 %v2692_v28, %v2692_v28  ;;  %v1315_v2 = vadd.f32 %v1314_v16, %v1295_v54 }
 0x2e1   :  { %v1184_v7 = vpop.f32.mrf.mxu1  ;;  %v1262_v38 = vadd.f32 %v1261_v12, %v2692_v28 }
 0x2e2   :  { %3119 = vst [vmem:[#allocation29_spill] sm:$0xff] %v2706_v51  ;;  %v1185_v9 = vadd.f32 %v1184_v7, %v2553_v63  ;;  %v2715_v56 = vmax.f32 %v1183_v39, 0.0  ;;  %v1297_v26 = vmul.f32 %v2706_v51, %v2706_v51  ;;  %v1336_v46 = vadd.f32 %v1335_v24, %v1296_v20 }
 0x2e3   :  { %v1186_v13 = vpop.f32.mrf.mxu1  ;;  %v1242_v57 = vadd.f32 %v1241_v35, %v2706_v51 }
 0x2e4   :  { %3120 = vst [vmem:[#allocation30_spill] sm:$0xff] %v2715_v56  ;;  %v2719_v22 = vmax.f32 %v1185_v9, 0.0  ;;  %v1187_v62 = vadd.f32 %v1186_v13, %v2557_v31  ;;  %v1298_v29 = vmul.f32 %v2715_v56, %v2715_v56  ;;  %v1263_v7 = vadd.f32 %v1262_v38, %v2715_v56 }
 0x2e5   :  { %v1190_v27 = vpop.f32.mrf.mxu1  ;;  %v1316_v54 = vadd.f32 %v1315_v2, %v1297_v26 }
 0x2e6   :  { %3121 = vst [vmem:[#allocation31_spill] sm:$0xff] %v2719_v22  ;;  %v2726_v60 = vmax.f32 %v1187_v62, 0.0  ;;  %v1299_v59 = vmul.f32 %v2719_v22, %v2719_v22  ;;  %v1191_v49 = vadd.f32 %v1190_v27, %v2553_v63  ;;  %v1243_v13 = vadd.f32 %v1242_v57, %v2719_v22 }
 0x2e7   :  { %v1192_v36 = vpop.f32.mrf.mxu1  ;;  %v1337_v62 = vadd.f32 %v1336_v46, %v1298_v29 }
 0x2e8   :  { %3122 = vst [vmem:[#allocation32_spill] sm:$0xff] %v2726_v60  ;;  %v1193_v55 = vadd.f32 %v1192_v36, %v2557_v31  ;;  %v1300_v9 = vmul.f32 %v2726_v60, %v2726_v60  ;;  %v2740_v11 = vmax.f32 %v1191_v49, 0.0  ;;  %v1317_v24 = vadd.f32 %v1316_v54, %v1299_v59 }
 0x2e9   :  { %v1194_v44 = vpop.f32.mrf.mxu1  ;;  %v1264_v27 = vadd.f32 %v1263_v7, %v2726_v60 }
 0x2ea   :  { %3123 = vst [vmem:[#allocation33_spill] sm:$0xff] %v2740_v11  ;;  %v2745_v16 = vmax.f32 %v1193_v55, 0.0  ;;  %v1195_v20 = vadd.f32 %v1194_v44, %v2553_v63  ;;  %v1301_v26 = vmul.f32 %v2740_v11, %v2740_v11  ;;  %v1244_v2 = vadd.f32 %v1243_v13, %v2740_v11 }
 0x2eb   :  { %v1196_v35 = vpop.f32.mrf.mxu1  ;;  %v1338_v57 = vadd.f32 %v1337_v62, %v1300_v9 }
 0x2ec   :  { %3124 = vst [vmem:[#allocation34_spill] sm:$0xff] %v2745_v16  ;;  %v1302_v38 = vmul.f32 %v2745_v16, %v2745_v16  ;;  %v2754_v49 = vmax.f32 %v1195_v20, 0.0  ;;  %v1197_v36 = vadd.f32 %v1196_v35, %v2557_v31  ;;  %v1265_v63 = vadd.f32 %v1264_v27, %v2745_v16 }
 0x2ed   :  { %v1318_v29 = vadd.f32 %v1317_v24, %v1301_v26 }
 0x2ee   :  { %3125 = vst [vmem:[#allocation35_spill] sm:$0xff] %v2754_v49  ;;  %v1245_v59 = vadd.f32 %v1244_v2, %v2754_v49  ;;  %v1303_v46 = vmul.f32 %v2754_v49, %v2754_v49  ;;  %v2761_v7 = vmax.f32 %v1197_v36, 0.0  ;;  %v1339_v55 = vadd.f32 %v1338_v57, %v1302_v38 }
 0x2f0   :  { %3126 = vst [vmem:[#allocation36_spill] sm:$0xff] %v2761_v7  ;;  %v1319_v44 = vadd.f32 %v1318_v29, %v1303_v46  ;;  %v1266_v13 = vadd.f32 %v1265_v63, %v2761_v7  ;;  %v1304_v31 = vmul.f32 %v2761_v7, %v2761_v7  ;;  %v1246_v9 = vrot.slane %v1245_v59, 4 }
 0x2f2   :  { %v1320_v62 = vrot.slane %v1319_v44, 4  ;;  %v1340_v24 = vadd.f32 %v1339_v55, %v1304_v31  ;;  %v1247_v27 = vadd.f32 %v1246_v9, %v1245_v59  ;;  %v1267_v26 = vrot.slane %v1266_v13, 4  ;;  %v2803_v31 = vld [vmem:[#allocation13 + $0xc8] sm:$0xff]  ;;  %v2807_v9 = vld [vmem:[#allocation13 + $0xc0] sm:$0xff] }
 0x2f4   :  { %v1341_v35 = vrot.slane %v1340_v24, 4  ;;  %v1248_v2 = vrot.slane %v1247_v27, 2  ;;  %v1268_v38 = vadd.f32 %v1267_v26, %v1266_v13  ;;  %v1321_v36 = vadd.f32 %v1320_v62, %v1319_v44  ;;  %v2788_v13 = vld [vmem:[#allocation13 + $0xf0] sm:$0xff]  ;;  %v2821_v26 = vld [vmem:[#allocation13 + $0x98] sm:$0xff] }
 0x2f5   :  { %v2813_v62 = vld [vmem:[#allocation13 + $0xb0] sm:$0xff] }
 0x2f6   :  { %v1249_v57 = vadd.f32 %v1248_v2, %v1247_v27  ;;  %v1269_v54 = vrot.slane %v1268_v38, 2  ;;  %v1322_v29 = vrot.slane %v1321_v36, 2  ;;  %v1342_v46 = vadd.f32 %v1341_v35, %v1340_v24  ;;  %v2815_v24 = vld [vmem:[#allocation13 + $0xa8] sm:$0xff]  ;;  %v2819_v27 = vld [vmem:[#allocation13 + $0xa0] sm:$0xff]  ;;  %v2825_v35 = vld [vmem:[#allocation13 + $0x90] sm:$0xff] }
 0x2f7   :  { %v2827_v2 = vld [vmem:[#allocation13 + $0x88] sm:$0xff] }
 0x2f8   :  { %v1250_v63 = vrot.slane %v1249_v57, 1  ;;  %v1270_v39 = vadd.f32 %v1269_v54, %v1268_v38  ;;  %v1323_v12 = vadd.f32 %v1322_v29, %v1321_v36  ;;  %v1343_v40 = vrot.slane %v1342_v46, 2  ;;  %v2831_v38 = vld [vmem:[#allocation13 + $0x80] sm:$0xff]  ;;  %v2833_v36 = vld [vmem:[#allocation13 + $0x78] sm:$0xff]  ;;  %v2839_v29 = vld [vmem:[#allocation13 + $0x68] sm:$0xff] }
 0x2fa   :  { %v2770_v6 = vadd.f32 %v1250_v63, %v1249_v57  ;;  %v1271_v42 = vrot.slane %v1270_v39, 1  ;;  %v1324_v20 = vrot.slane %v1323_v12, 1  ;;  %v1344_v45 = vadd.f32 %v1343_v40, %v1342_v46  ;;  %v2786_v40 = vld [vmem:[#allocation13 + $0xf8] sm:$0xff]  ;;  %v2837_v57 = vld [vmem:[#allocation13 + $0x70] sm:$0xff]  ;;  %v2843_v46 = vld [vmem:[#allocation13 + $0x60] sm:$0xff] }
 0x2fb   :  { %1490 = vmatprep.subr.mxu0 %v2786_v40  ;;  %v2845_v63 = vld [vmem:[#allocation13 + $0x58] sm:$0xff] }
 0x2fc   :  { %1348 = vrot.lane.b32.xlu0 %v2770_v6, %s2283_s0  ;;  %v2774_v59 = vadd.f32 %v1271_v42, %v1270_v39  ;;  %v1345_v55 = vrot.slane %v1344_v45, 1  ;;  %v2778_v44 = vadd.f32 %v1324_v20, %v1323_v12  ;;  %v2790_v42 = vld [vmem:[#allocation13 + $0xe8] sm:$0xff]  ;;  %1491 = vmatpush1.xpose.msra.mxu0 %v2788_v13  ;;  %v2795_v39 = vld [vmem:[#allocation13 + $0xe0] sm:$0xff]  ;;  %v2797_v12 = vld [vmem:[#allocation13 + $0xd8] sm:$0xff] }
 0x2fd   :  { %1492 = vmatprep.subr.mxu0 %v2790_v42  ;;  %v2809_v20 = vld [vmem:[#allocation13 + $0xb8] sm:$0xff] }
 0x2fe   :  { %1354 = vrot.lane.b32.xlu1 %v2774_v59, %s2283_s0  ;;  %v2782_v54 = vadd.f32 %v1345_v55, %v1344_v45  ;;  %v2801_v45 = vld [vmem:[#allocation13 + $0xd0] sm:$0xff] }
 0x2ff   :  { %v2849_v55 = vld [vmem:[#allocation13 + $0x50] sm:$0xff] }
 0x300   :  { %1359 = vrot.lane.b32.xlu0 %v2778_v44, %s2283_s0  ;;  %1493 = vmatpush1.xpose.msra.mxu0 %v2795_v39 }
 0x301   :  { %1494 = vmatprep.subr.mxu0 %v2797_v12 }
 0x302   :  { %1365 = vrot.lane.b32.xlu1 %v2782_v54, %s2283_s0 }
 0x304   :  { %1495 = vmatpush1.xpose.msra.mxu0 %v2801_v45 }
 0x305   :  { %1496 = vmatprep.subr.mxu0 %v2803_v31 }
 0x308   :  { %1497 = vmatpush1.xpose.msra.mxu0 %v2807_v9 }
 0x309   :  { %1498 = vmatprep.subr.mxu0 %v2809_v20 }
 0x30c   :  { %1499 = vmatpush1.xpose.msra.mxu0 %v2813_v62 }
 0x30d   :  { %1500 = vmatprep.subr.mxu0 %v2815_v24 }
 0x310   :  { %1501 = vmatpush1.xpose.msra.mxu0 %v2819_v27 }
 0x311   :  { %1502 = vmatprep.subr.mxu0 %v2821_v26 }
 0x314   :  { %1503 = vmatpush1.xpose.msra.mxu0 %v2825_v35 }
 0x315   :  { %1504 = vmatprep.subr.mxu0 %v2827_v2 }
 0x318   :  { %1505 = vmatpush1.xpose.msra.mxu0 %v2831_v38 }
 0x319   :  { %1506 = vmatprep.subr.mxu0 %v2833_v36 }
 0x31c   :  { %1507 = vmatpush1.xpose.msra.mxu0 %v2837_v57 }
 0x31d   :  { %1508 = vmatprep.subr.mxu0 %v2839_v29 }
 0x320   :  { %1509 = vmatpush1.xpose.msra.mxu0 %v2843_v46 }
 0x321   :  { %1510 = vmatprep.subr.mxu0 %v2845_v63 }
 0x324   :  { %1511 = vmatpush1.xpose.msra.mxu0 %v2849_v55 }
 0x325   :  { %1512 = vmatprep.subr.mxu0 %v2851_v8 }
 0x328   :  { %1513 = vmatpush1.xpose.msra.mxu0 %v2855_v14 }
 0x329   :  { %1514 = vmatprep.subr.mxu0 %v2857_v1 }
 0x32c   :  { %1515 = vmatpush1.xpose.msra.mxu0 %v2861_v33 }
 0x32d   :  { %1516 = vmatprep.subr.mxu0 %v2863_v17 }
 0x330   :  { %1517 = vmatpush1.xpose.msra.mxu0 %v2867_v41 }
 0x331   :  { %1518 = vmatprep.subr.mxu0 %v2874_v58 }
 0x36e   :  { %v1349_v10 = vpop.permute.xlu0 %1348 }
 0x36f   :  { %v1351_v11 = vadd.f32 %v1349_v10, %v2770_v6  ;;  %v1375_v10 = vld [vmem:[#allocation10] sm:$0x1]  ;;  %v2877_v6 = vld [vmem:[#allocation13 + $0x10] sm:$0xff] }
 0x370   :  { %v1355_v49 = vpop.permute.xlu1 %1354  ;;  %1519 = vmatpush1.xpose.msra.mxu0 %v2877_v6 }
 0x371   :  { %v1352_v16 = vadd.f32 %v1351_v11, %v2774_v59 }
 0x372   :  { %v1360_v7 = vpop.permute.xlu0 %1359 }
 0x373   :  { %v1357_v51 = vadd.f32 %v1355_v49, %v1352_v16  ;;  %v1362_v22 = vadd.f32 %v1360_v7, %v2778_v44 }
 0x374   :  { %v1366_v37 = vpop.permute.xlu1 %1365 }
 0x375   :  { %v1370_v56 = vmul.f32 0.001953125, %v1357_v51  ;;  %v1363_v60 = vadd.f32 %v1362_v22, %v2782_v54  ;;  %v1379_v22 = vld [vmem:[#allocation11] sm:$0x1] }
 0x377   :  { %v1368_v19 = vadd.f32 %v1366_v37, %v1363_v60  ;;  %v1372_v21 = vmul.f32 %v1370_v56, %v1370_v56 }
 0x379   :  { %v1371_v28 = vmul.f32 0.001953125, %v1368_v19  ;;  %v2881_v19 = vld [vmem:[#allocation13 + $0x8] sm:$0xff] }
 0x37a   :  { %1520 = vmatprep.subr.mxu0 %v2881_v19 }
 0x37b   :  { %v1373_v30 = vsub.f32 %v1371_v28, %v1372_v21 }
 0x37d   :  { %v1374_v25 = vmax.f32 %v1373_v30, 0.0 }
 0x37f   :  { %v1376_v53 = vadd.f32 1e-05, %v1374_v25  ;;  %v2884_v25 = vld [vmem:[#allocation13] sm:$0xff] }
 0x380   :  { %1521 = vmatpush1.xpose.msra.mxu0 %v2884_v25 }
 0x381   :  { %2067 = vrsqrt.f32 %v1376_v53 }
 0x38e   :  { %v2068_v11 = vpop.eup %2067 }
 0x38f   :  { %v1378_v51 = vmul.f32 %v2068_v11, %v1375_v10 }
 0x391   :  { %v1386_v37 = vrot.slane %v1378_v51, %v2481_v32  ;;  %v1380_v60 = vmul.f32 %v1378_v51, %v1370_v56 }
 0x393   :  { %1387 = vrot.lane.b32.xlu0 %v1386_v37, %s2283_s0  ;;  %v1381_v30 = vsub.f32 %v1379_v22, %v1380_v60 }
 0x395   :  { %v1396_v53 = vrot.slane %v1381_v30, %v2481_v32 }
 0x397   :  { %1397 = vrot.lane.b32.xlu1 %v1396_v53, %s2283_s0 }
 0x405   :  { %v1388_v21 = vpop.permute.xlu0 %1387 }
 0x406   :  { %v1391_v28 = vsel %vm1390_vm0, %v1378_v51, %v1388_v21 }
 0x407   :  { %v2891_v56 = vrot.slane %v1391_v28, %v2481_v32 }
 0x409   :  { %v1465_v16 = vmul.f32 %v2891_v56, %v2795_v39  ;;  %v1466_v49 = vmul.f32 %v2891_v56, %v2790_v42  ;;  %v1467_v7 = vmul.f32 %v2891_v56, %v2788_v13  ;;  %v1468_v59 = vmul.f32 %v2891_v56, %v2786_v40  ;;  %v1398_v44 = vpop.permute.xlu1 %1397 }
 0x40a   :  { %v1462_v54 = vmul.f32 %v2891_v56, %v2803_v31  ;;  %v1464_v10 = vmul.f32 %v2891_v56, %v2797_v12  ;;  %v1400_v51 = vsel %vm1390_vm0, %v1381_v30, %v1398_v44  ;;  %v1461_v40 = vmul.f32 %v2891_v56, %v2807_v9 }
 0x40b   :  { %v1483_v11 = vpack.c.bf16 %v1467_v7, %v1465_v16  ;;  %v1489_v39 = vrot.slane %v1400_v51, %v2481_v32  ;;  %v1484_v22 = vpack.c.bf16 %v1468_v59, %v1466_v49  ;;  %v1463_v13 = vmul.f32 %v2891_v56, %v2801_v45  ;;  %v3141_v51 = vld [vmem:[#allocation27_spill] sm:$0xff] }
 0x40c   :  { %v1482_v42 = vpack.c.bf16 %v1464_v10, %v1462_v54  ;;  %v1458_v12 = vmul.f32 %v2891_v56, %v2815_v24  ;;  %v1460_v31 = vmul.f32 %v2891_v56, %v2809_v20  ;;  %v1457_v30 = vmul.f32 %v2891_v56, %v2819_v27 }
 0x40d   :  { %1554 = vmatprep.mubr.f32.mxu0 %v1489_v39  ;;  %1583 = vmatprep.subr.bf16.mxu1 %v1484_v22  ;;  %v1481_v37 = vpack.c.bf16 %v1463_v13, %v1461_v40  ;;  %v1459_v53 = vmul.f32 %v2891_v56, %v2813_v62  ;;  %v1454_v9 = vmul.f32 %v2891_v56, %v2827_v2  ;;  %v3147_v22 = vld [vmem:[#allocation30_spill] sm:$0xff]  ;;  %v3152_v13 = vld [vmem:[#allocation36_spill] sm:$0xff] }
 0x40e   :  { %1555 = vmatmul.mubr.f32.vlgmr.msra.gmra.mxu0 %v1489_v39  ;;  %1584 = vmatpush1.bf16.xpose.msra.mxu1 %v1483_v11  ;;  %v1480_v60 = vpack.c.bf16 %v1460_v31, %v1458_v12  ;;  %v1456_v45 = vmul.f32 %v2891_v56, %v2821_v26  ;;  %v1453_v20 = vmul.f32 %v2891_v56, %v2831_v38  ;;  %v3144_v39 = vld [vmem:[#allocation25_spill] sm:$0xff]  ;;  %v3153_v12 = vld [vmem:[#allocation34_spill] sm:$0xff] }
 0x40f   :  { %1585 = vmatprep.subr.bf16.mxu1 %v1482_v42  ;;  %v1479_v24 = vpack.c.bf16 %v1459_v53, %v1457_v30  ;;  %v1455_v28 = vmul.f32 %v2891_v56, %v2825_v35  ;;  %v1450_v27 = vmul.f32 %v2891_v56, %v2839_v29  ;;  %v1452_v62 = vmul.f32 %v2891_v56, %v2833_v36  ;;  %v3150_v42 = vld [vmem:[#allocation29_spill] sm:$0xff] }
 0x410   :  { %v1478_v21 = vpack.c.bf16 %v1456_v45, %v1454_v9  ;;  %v1449_v26 = vmul.f32 %v2891_v56, %v2843_v46  ;;  %v1451_v49 = vmul.f32 %v2891_v56, %v2837_v57  ;;  %v1446_v38 = vmul.f32 %v2891_v56, %v2851_v8  ;;  %v1485_v45 = vld [vmem:[#allocation14] sm:$0x1] }
 0x411   :  { %v1477_v2 = vpack.c.bf16 %v1455_v28, %v1453_v20  ;;  %v1476_v16 = vpack.c.bf16 %v1452_v62, %v1450_v27  ;;  %v1448_v35 = vmul.f32 %v2891_v56, %v2845_v63  ;;  %v1445_v36 = vmul.f32 %v2891_v56, %v2855_v14 }
 0x412   :  { %v1475_v29 = vpack.c.bf16 %v1451_v49, %v1449_v26  ;;  %v1447_v59 = vmul.f32 %v2891_v56, %v2849_v55  ;;  %v1442_v46 = vmul.f32 %v2891_v56, %v2863_v17  ;;  %v1444_v57 = vmul.f32 %v2891_v56, %v2857_v1 }
 0x413   :  { %v1474_v7 = vpack.c.bf16 %v1448_v35, %v1446_v38  ;;  %v1441_v63 = vmul.f32 %v2891_v56, %v2867_v41  ;;  %v1443_v54 = vmul.f32 %v2891_v56, %v2861_v33  ;;  %v1440_v14 = vmul.f32 %v2891_v56, %v2874_v58 }
 0x414   :  { %v1473_v8 = vpack.c.bf16 %v1447_v59, %v1445_v36  ;;  %v1472_v44 = vpack.c.bf16 %v1444_v57, %v1442_v46  ;;  %v1438_v55 = vmul.f32 %v2891_v56, %v2881_v19  ;;  %v1439_v1 = vmul.f32 %v2891_v56, %v2877_v6 }
 0x415   :  { %v1471_v17 = vpack.c.bf16 %v1443_v54, %v1441_v63  ;;  %v1437_v11 = vmul.f32 %v2891_v56, %v2884_v25  ;;  %v3127_v33 = vpack.c.bf16 %v2563_v4, %v2561_v5  ;;  %v3128_v58 = vpack.c.bf16 %v2576_v43, %v2578_v18  ;;  %v3134_v43 = vld [vmem:[#allocation24_spill] sm:$0xff]  ;;  %v3135_v18 = vld [vmem:[#allocation23_spill] sm:$0xff]  ;;  %v3138_v56 = vld [vmem:[#allocation22_spill] sm:$0xff] }
 0x416   :  { %1586 = vmatpush1.bf16.xpose.msra.mxu1 %v1481_v37  ;;  %v1470_v10 = vpack.c.bf16 %v1440_v14, %v1438_v55  ;;  %v3129_v19 = vpack.c.bf16 %v2571_v0, %v2574_v15  ;;  %v3130_v6 = vpack.c.bf16 %v2592_v34, %v2594_v52  ;;  %v3131_v25 = vpack.c.bf16 %v2587_v23, %v2590_v61  ;;  %v3137_v15 = vld [vmem:[#allocation21_spill] sm:$0xff]  ;;  %v3140_v52 = vld [vmem:[#allocation28_spill] sm:$0xff]  ;;  %v3143_v61 = vld [vmem:[#allocation26_spill] sm:$0xff] }
 0x417   :  { %1587 = vmatprep.subr.bf16.mxu1 %v1480_v60  ;;  %v1469_v41 = vpack.c.bf16 %v1439_v1, %v1437_v11  ;;  %v3132_v5 = vpack.c.bf16 %v2621_v3, %v2625_v47  ;;  %v3133_v4 = vpack.c.bf16 %v2613_v48, %v2616_v50  ;;  %v3136_v0 = vpack.c.bf16 %v3134_v43, %v3135_v18  ;;  %v3146_v47 = vld [vmem:[#allocation32_spill] sm:$0xff]  ;;  %v3149_v50 = vld [vmem:[#allocation31_spill] sm:$0xff]  ;;  %v3156_v60 = vld [vmem:[#allocation33_spill] sm:$0xff] }
 0x418   :  { %v3139_v34 = vpack.c.bf16 %v3137_v15, %v3138_v56  ;;  %v3142_v23 = vpack.c.bf16 %v3140_v52, %v3141_v51  ;;  %v3145_v3 = vpack.c.bf16 %v3143_v61, %v3144_v39  ;;  %v3148_v48 = vpack.c.bf16 %v3146_v47, %v3147_v22  ;;  %v3155_v37 = vld [vmem:[#allocation35_spill] sm:$0xff] }
 0x419   :  { %v3151_v40 = vpack.c.bf16 %v3149_v50, %v3150_v42  ;;  %v3154_v31 = vpack.c.bf16 %v3152_v13, %v3153_v12  ;;  %v3157_v30 = vpack.c.bf16 %v3155_v37, %v3156_v60 }
 0x41e   :  { %1588 = vmatpush1.bf16.xpose.msra.mxu1 %v1479_v24 }
 0x41f   :  { %1589 = vmatprep.subr.bf16.mxu1 %v1478_v21 }
 0x426   :  { %1590 = vmatpush1.bf16.xpose.msra.mxu1 %v1477_v2 }
 0x427   :  { %1591 = vmatprep.subr.bf16.mxu1 %v1476_v16 }
 0x42e   :  { %1592 = vmatpush1.bf16.xpose.msra.mxu1 %v1475_v29 }
 0x42f   :  { %1593 = vmatprep.subr.bf16.mxu1 %v1474_v7 }
 0x436   :  { %1594 = vmatpush1.bf16.xpose.msra.mxu1 %v1473_v8 }
 0x437   :  { %1595 = vmatprep.subr.bf16.mxu1 %v1472_v44 }
 0x43e   :  { %1596 = vmatpush1.bf16.xpose.msra.mxu1 %v1471_v17 }
 0x43f   :  { %1597 = vmatprep.subr.bf16.mxu1 %v1470_v10 }
 0x446   :  { %1598 = vmatpush1.bf16.xpose.msra.mxu1 %v1469_v41 }
 0x44d   :  { %1616 = vmatmul.mubr.bf16.vlgmr.msra.gmra.mxu1 %v3127_v33 }
 0x44e   :  { %1623 = vmatprep.mubr.bf16.mxu1 %v3128_v58 }
 0x455   :  { %1624 = vmatmul.mubr.bf16.gmra.mxu1 %v3129_v19 }
 0x456   :  { %1631 = vmatprep.mubr.bf16.mxu1 %v3130_v6 }
 0x45d   :  { %1632 = vmatmul.mubr.bf16.gmra.mxu1 %v3131_v25 }
 0x45e   :  { %1639 = vmatprep.mubr.bf16.mxu1 %v3132_v5 }
 0x465   :  { %1640 = vmatmul.mubr.bf16.gmra.mxu1 %v3133_v4 }
 0x466   :  { %1647 = vmatprep.mubr.bf16.mxu1 %v3136_v0 }
 0x46d   :  { %1648 = vmatmul.mubr.bf16.gmra.mxu1 %v3139_v34 }
 0x46e   :  { %1655 = vmatprep.mubr.bf16.mxu1 %v3142_v23 }
 0x475   :  { %1656 = vmatmul.mubr.bf16.gmra.mxu1 %v3145_v3 }
 0x476   :  { %1663 = vmatprep.mubr.bf16.mxu1 %v3148_v48 }
 0x47d   :  { %1664 = vmatmul.mubr.bf16.gmra.mxu1 %v3151_v40 }
 0x47e   :  { %1671 = vmatprep.mubr.bf16.mxu1 %v3154_v31 }
 0x485   :  { %1672 = vmatmul.mubr.bf16.gmra.mxu1 %v3157_v30 }
 0x4ce   :  { %v1556_v53 = vpop.f32.mrf.mxu0 }
 0x4cf   :  { %v1560_v24 = vadd.f32 %v1556_v53, %v1485_v45 }
 0x4d0   :  { %v1558_v9 = vpop.f32.mrf.mxu0 }
 0x4d1   :  { %v3004_v21 = vrot.slane %v1560_v24, %v2481_v32 }
 0x50d   :  { %v1617_v20 = vpop.f32.mrf.mxu1 }
 0x50e   :  { %v1618_v28 = vadd.f32 %v1617_v20, %v3004_v21 }
 0x50f   :  { %v1619_v27 = vpop.f32.mrf.mxu1 }
 0x510   :  { %2069 = vtanh.f32 %v1618_v28 }
 0x511   :  { %v1620_v62 = vpop.f32.mrf.mxu1 }
 0x512   :  { %v1621_v2 = vadd.f32 %v1620_v62, %v3004_v21 }
 0x513   :  { %v1622_v16 = vpop.f32.mrf.mxu1 }
 0x514   :  { %2071 = vtanh.f32 %v1621_v2 }
 0x515   :  { %v1625_v26 = vpop.f32.mrf.mxu1 }
 0x516   :  { %v1626_v49 = vadd.f32 %v1625_v26, %v3004_v21 }
 0x517   :  { %v1627_v38 = vpop.f32.mrf.mxu1 }
 0x518   :  { %2073 = vtanh.f32 %v1626_v49 }
 0x519   :  { %v1628_v35 = vpop.f32.mrf.mxu1 }
 0x51a   :  { %v1629_v29 = vadd.f32 %v1628_v35, %v3004_v21 }
 0x51b   :  { %v1630_v32 = vpop.f32.mrf.mxu1 }
 0x51c   :  { %2075 = vtanh.f32 %v1629_v29 }
 0x51d   :  { %v2070_v7 = vpop.eup %2069  ;;  %v1633_v36 = vpop.f32.mrf.mxu1 }
 0x51e   :  { %1696 = vst [vmem:[%s3079_s9] sm:$0xff] %v2070_v7  ;;  %v1634_v59 = vadd.f32 %v1633_v36, %v3004_v21 }
 0x51f   :  { %v1635_v46 = vpop.f32.mrf.mxu1 }
 0x520   :  { %2077 = vtanh.f32 %v1634_v59 }
 0x521   :  { %v2072_v57 = vpop.eup %2071  ;;  %v1636_v8 = vpop.f32.mrf.mxu1 }
 0x522   :  { %1697 = vst [vmem:[%s3079_s9 + $0x8] sm:$0xff] %v2072_v57  ;;  %v1637_v44 = vadd.f32 %v1636_v8, %v3004_v21 }
 0x523   :  { %v1638_v63 = vpop.f32.mrf.mxu1 }
 0x524   :  { %2079 = vtanh.f32 %v1637_v44 }
 0x525   :  { %v2074_v54 = vpop.eup %2073  ;;  %v1641_v14 = vpop.f32.mrf.mxu1 }
 0x526   :  { %1698 = vst [vmem:[%s3079_s9 + $0x10] sm:$0xff] %v2074_v54  ;;  %v1642_v55 = vadd.f32 %v1641_v14, %v3004_v21 }
 0x527   :  { %v1643_v17 = vpop.f32.mrf.mxu1 }
 0x528   :  { %2081 = vtanh.f32 %v1642_v55 }
 0x529   :  { %v2076_v10 = vpop.eup %2075  ;;  %v1644_v1 = vpop.f32.mrf.mxu1 }
 0x52a   :  { %1699 = vst [vmem:[%s3079_s9 + $0x18] sm:$0xff] %v2076_v10  ;;  %v1645_v11 = vadd.f32 %v1644_v1, %v3004_v21 }
 0x52b   :  { %v1646_v41 = vpop.f32.mrf.mxu1 }
 0x52c   :  { %2083 = vtanh.f32 %v1645_v11 }
 0x52d   :  { %v2078_v33 = vpop.eup %2077  ;;  %v1649_v58 = vpop.f32.mrf.mxu1 }
 0x52e   :  { %1700 = vst [vmem:[%s3079_s9 + $0x20] sm:$0xff] %v2078_v33  ;;  %v1650_v19 = vadd.f32 %v1649_v58, %v3004_v21 }
 0x52f   :  { %v1651_v6 = vpop.f32.mrf.mxu1 }
 0x530   :  { %2085 = vtanh.f32 %v1650_v19 }
 0x531   :  { %v2080_v25 = vpop.eup %2079  ;;  %v1652_v5 = vpop.f32.mrf.mxu1 }
 0x532   :  { %1701 = vst [vmem:[%s3079_s9 + $0x28] sm:$0xff] %v2080_v25  ;;  %v1653_v4 = vadd.f32 %v1652_v5, %v3004_v21 }
 0x533   :  { %v1654_v43 = vpop.f32.mrf.mxu1 }
 0x534   :  { %2087 = vtanh.f32 %v1653_v4 }
 0x535   :  { %v2082_v18 = vpop.eup %2081  ;;  %v1657_v0 = vpop.f32.mrf.mxu1 }
 0x536   :  { %1702 = vst [vmem:[%s3079_s9 + $0x30] sm:$0xff] %v2082_v18  ;;  %v1658_v15 = vadd.f32 %v1657_v0, %v3004_v21 }
 0x537   :  { %v1659_v56 = vpop.f32.mrf.mxu1 }
 0x538   :  { %2089 = vtanh.f32 %v1658_v15 }
 0x539   :  { %v2084_v34 = vpop.eup %2083  ;;  %v1660_v52 = vpop.f32.mrf.mxu1 }
 0x53a   :  { %1703 = vst [vmem:[%s3079_s9 + $0x38] sm:$0xff] %v2084_v34  ;;  %v1661_v51 = vadd.f32 %v1660_v52, %v3004_v21 }
 0x53b   :  { %v1662_v23 = vpop.f32.mrf.mxu1 }
 0x53c   :  { %2091 = vtanh.f32 %v1661_v51 }
 0x53d   :  { %v2086_v61 = vpop.eup %2085  ;;  %v1665_v39 = vpop.f32.mrf.mxu1 }
 0x53e   :  { %1704 = vst [vmem:[%s3079_s9 + $0x40] sm:$0xff] %v2086_v61  ;;  %v1666_v3 = vadd.f32 %v1665_v39, %v3004_v21 }
 0x53f   :  { %v1667_v47 = vpop.f32.mrf.mxu1 }
 0x540   :  { %2093 = vtanh.f32 %v1666_v3 }
 0x541   :  { %v2088_v22 = vpop.eup %2087  ;;  %v1668_v48 = vpop.f32.mrf.mxu1 }
 0x542   :  { %1705 = vst [vmem:[%s3079_s9 + $0x48] sm:$0xff] %v2088_v22  ;;  %v1669_v50 = vadd.f32 %v1668_v48, %v3004_v21 }
 0x543   :  { %v1670_v42 = vpop.f32.mrf.mxu1 }
 0x544   :  { %2095 = vtanh.f32 %v1669_v50 }
 0x545   :  { %v2090_v40 = vpop.eup %2089  ;;  %v1673_v13 = vpop.f32.mrf.mxu1 }
 0x546   :  { %1706 = vst [vmem:[%s3079_s9 + $0x50] sm:$0xff] %v2090_v40  ;;  %v1674_v12 = vadd.f32 %v1673_v13, %v3004_v21 }
 0x547   :  { %v1675_v31 = vpop.f32.mrf.mxu1 }
 0x548   :  { %2097 = vtanh.f32 %v1674_v12 }
 0x549   :  { %v2092_v37 = vpop.eup %2091  ;;  %v1676_v60 = vpop.f32.mrf.mxu1 }
 0x54a   :  { %1707 = vst [vmem:[%s3079_s9 + $0x58] sm:$0xff] %v2092_v37  ;;  %v1677_v30 = vadd.f32 %v1676_v60, %v3004_v21 }
 0x54b   :  { %v1678_v53 = vpop.f32.mrf.mxu1 }
 0x54c   :  { %2099 = vtanh.f32 %v1677_v30 }
 0x54d   :  { %v2094_v9 = vpop.eup %2093 }
 0x54e   :  { %1708 = vst [vmem:[%s3079_s9 + $0x60] sm:$0xff] %v2094_v9 }
 0x551   :  { %v2096_v45 = vpop.eup %2095 }
 0x552   :  { %1709 = vst [vmem:[%s3079_s9 + $0x68] sm:$0xff] %v2096_v45 }
 0x555   :  { %v2098_v24 = vpop.eup %2097 }
 0x556   :  { %1710 = vst [vmem:[%s3079_s9 + $0x70] sm:$0xff] %v2098_v24 }
 0x559   :  { %v2100_v20 = vpop.eup %2099 }
 0x55a   :  { %1711 = vst [vmem:[%s3079_s9 + $0x78] sm:$0xff] %v2100_v20 }
 0x55b   :  { %1716 = vsyncpa [#allocation4], 1 }
 0x55c   :  { %1717 = vsyncpa [#allocation6], 1 }
 0x55d   :  { %1718 = vsyncpa [#allocation9], 1 }
 0x55e   :  { %1719 = vsyncpa [#allocation12], 1 }
 0x55f   :  { %1720 = vsyncpa [#allocation15], 1 }

</bundles_post_ra>
